<compile_context>
chip_gen: v7x
topology: tpu7x:2x2x1
jax: 0.10.0
libtpu: 0.0.40
codegen_flags: <defaults>
</compile_context>

<pallas_src>
import functools

import jax
import jax.numpy as jnp
from jax.experimental import pallas as pl
from jax.experimental.pallas import tpu as pltpu


def _group_norm_relu(a, gamma, beta, nb, hw, eps):
    """GroupNorm(num_groups == num_channels) + ReLU.

    a: (nb*hw, C) f32, gamma/beta: (1, 1, C) f32.  Centered variance (stable),
    folded scale/shift, f32 math throughout.  Returns (nb, hw, C) f32.
    """
    c = a.shape[-1]
    y3 = a.reshape(nb, hw, c)
    inv_hw = 1.0 / hw
    mean = jnp.sum(y3, axis=1, keepdims=True) * inv_hw      # (nb, 1, c)
    d = y3 - mean
    var = jnp.sum(d * d, axis=1, keepdims=True) * inv_hw    # (nb, 1, c)
    scale = gamma * jax.lax.rsqrt(var + eps)                 # (nb, 1, c)
    return jnp.maximum(d * scale + beta, 0.0)                # (nb, hw, c)


def _downsampling_unit_kernel(p1_ref, w1_ref, g1_ref, b1_ref, w2_ref, g2_ref,
                              b2_ref, o_ref, pad2_ref, *, nb, hp, wp, cout,
                              ksz, eps):
    r = ksz // 2
    hw = hp * wp
    m = nb * hw

    # ---- conv1: ONE MXU matmul on host-prebuilt im2col patches --------------
    a1 = jnp.dot(p1_ref[...], w1_ref[...], preferred_element_type=jnp.float32)
    y1 = _group_norm_relu(a1, g1_ref[...], b1_ref[...], nb, hw, eps)  # f32

    # ---- conv2: pad y1 in a VMEM scratch, im2col, ONE matmul ----------------
    # Zero only the halo border strips; the interior is fully rewritten below,
    # and re-zeroing every step keeps this correct under core-sharded grids.
    pad2_ref[:, :r, :, :] = jnp.zeros((nb, r, wp + 2 * r, cout), jnp.float32)
    pad2_ref[:, r + hp:, :, :] = jnp.zeros((nb, r, wp + 2 * r, cout),
                                           jnp.float32)
    pad2_ref[:, r:r + hp, :r, :] = jnp.zeros((nb, hp, r, cout), jnp.float32)
    pad2_ref[:, r:r + hp, r + wp:, :] = jnp.zeros((nb, hp, r, cout),
                                                  jnp.float32)
    pad2_ref[:, r:r + hp, r:r + wp, :] = y1.reshape(nb, hp, wp, cout)

    w2 = w2_ref[...]
    taps = [pad2_ref[:, dy:dy + hp, dx:dx + wp, :]
            for dy in range(ksz) for dx in range(ksz)]
    patches2 = (jnp.concatenate(taps, axis=-1)
                .reshape(m, ksz * ksz * cout)
                .astype(w2.dtype))                       # bf16 for the MXU
    a2 = jnp.dot(patches2, w2, preferred_element_type=jnp.float32)
    y2 = _group_norm_relu(a2, g2_ref[...], b2_ref[...], nb, hw, eps)  # (nb,hw,c)

    # ---- lane-dense, NCHW-ready store: (nb, cout, hw) -----------------------
    # Cheap transpose of a few vregs; removes the wrapper-side NHWC->NCHW
    # transpose (a full extra HBM round trip) and makes the output stores
    # dense along the spatial (lane) axis instead of masked 8/128-lane stores.
    if nb <= 8:            # nb is a small static chunk: unrolled 2-D transposes
        for b in range(nb):
            o_ref[b] = y2[b].T
    else:
        o_ref[...] = jnp.transpose(y2, (0, 2, 1))


def _step_vmem_bytes(nb, hw, hp, wp, cin, cout, ksz, mm_itemsize):
    """Byte-accurate-ish per-grid-step VMEM footprint estimate."""
    r = ksz // 2
    m = nb * hw
    k1 = ksz * ksz * cin
    k2 = ksz * ksz * cout
    by = 0
    by += 2 * m * k1 * mm_itemsize                        # conv1 patch tile x2
    by += 2 * nb * cout * hw * 4                          # output tile x2
    by += nb * (hp + 2 * r) * (wp + 2 * r) * cout * 4     # pad2 scratch
    by += 2 * (k1 + k2) * cout * mm_itemsize + 2 * 4 * cout * 4  # weights/affine
    by += 4 * m * cout * 4                                # a1,y1,a2,y2 live
    by += m * k2 * (4 + mm_itemsize)                      # conv2 patches build
    return by


def downsampling_unit(x_nchw, params, *, eps=1e-5, matmul_dtype=jnp.bfloat16):
    n, cin, h, w = x_nchw.shape
    hp, wp = h // 2, w // 2
    hw = hp * wp
    w1_oihw = params["w1"].astype(jnp.float32)
    w2_oihw = params["w2"].astype(jnp.float32)
    cout, _, ksz, _ = w1_oihw.shape
    r = ksz // 2
    mm_itemsize = jnp.dtype(matmul_dtype).itemsize

    # ---- host-side (XLA) prep: pool + conv1 im2col --------------------------
    x = x_nchw.astype(jnp.float32)
    pooled = x.reshape(n, cin, hp, 2, wp, 2).max(axis=(3, 5))   # (n,cin,hp,wp)
    pooled_nhwc = jnp.transpose(pooled, (0, 2, 3, 1))           # (n,hp,wp,cin)
    padded = jnp.pad(pooled_nhwc, ((0, 0), (r, r), (r, r), (0, 0)))
    taps = [padded[:, dy:dy + hp, dx:dx + wp, :]
            for dy in range(ksz) for dx in range(ksz)]
    patches1 = (jnp.concatenate(taps, axis=-1)
                .reshape(n * hw, ksz * ksz * cin)
                .astype(matmul_dtype))                          # (M, 9*cin)

    # Conv weights OIHW -> im2col layout (K*K*Cin, Cout), row = (dy*K+dx)*Cin+ci.
    w1_r = (jnp.transpose(w1_oihw, (2, 3, 1, 0))
            .reshape(ksz * ksz * cin, cout).astype(matmul_dtype))
    w2_r = (jnp.transpose(w2_oihw, (2, 3, 1, 0))
            .reshape(ksz * ksz * cout, cout).astype(matmul_dtype))
    g1 = params["g1"].reshape(1, 1, cout).astype(jnp.float32)
    b1 = params["b1"].reshape(1, 1, cout).astype(jnp.float32)
    g2 = params["g2"].reshape(1, 1, cout).astype(jnp.float32)
    b2 = params["b2"].reshape(1, 1, cout).astype(jnp.float32)

    # ---- nb selection: largest batch chunk that fits a VMEM byte budget -----
    try:
        info = pltpu.get_tpu_info()
        vmem_cap = int(getattr(info, "vmem_capacity_bytes", 64 * 1024 * 1024))
    except Exception:  # pragma: no cover - conservative fallback (v7x: 64 MiB)
        vmem_cap = 64 * 1024 * 1024
    budget = int(0.45 * vmem_cap)
    align = 16 if mm_itemsize == 2 else 8     # bf16/f32 sublane tiling

    def fits(nb):
        if nb != n and (nb * hw) % align != 0:
            return False
        return _step_vmem_bytes(nb, hw, hp, wp, cin, cout, ksz,
                                mm_itemsize) <= budget

    divisors = [d for d in range(n, 0, -1) if n % d == 0]
    fitting = [d for d in divisors if fits(d)]
    if not fitting:
        nb = 1                                 # best effort; budget exceeded
    else:
        full_tiles = [d for d in fitting if (d * hw) % 128 == 0]  # full MXU M
        nb = (full_tiles or fitting)[0]
        if nb < n:
            # If we must chunk anyway, prefer an even step count so the
            # "parallel" axis can shard across v7x's two TensorCores.
            even = [d for d in (full_tiles or fitting) if (n // d) % 2 == 0]
            if even:
                nb = even[0]
    steps = n // nb
    vmem_limit = int(min(0.9 * vmem_cap,
                         max(32 * 1024 * 1024,
                             2 * _step_vmem_bytes(nb, hw, hp, wp, cin, cout,
                                                  ksz, mm_itemsize))))

    kernel = functools.partial(_downsampling_unit_kernel, nb=nb, hp=hp, wp=wp,
                               cout=cout, ksz=ksz, eps=eps)

    out = pl.pallas_call(
        kernel,
        out_shape=jax.ShapeDtypeStruct((n, cout, hw), jnp.float32),
        grid=(steps,),
        in_specs=[
            pl.BlockSpec((nb * hw, ksz * ksz * cin), lambda i: (i, 0)),
            pl.BlockSpec((ksz * ksz * cin, cout), lambda i: (0, 0)),
            pl.BlockSpec((1, 1, cout), lambda i: (0, 0, 0)),
            pl.BlockSpec((1, 1, cout), lambda i: (0, 0, 0)),
            pl.BlockSpec((ksz * ksz * cout, cout), lambda i: (0, 0)),
            pl.BlockSpec((1, 1, cout), lambda i: (0, 0, 0)),
            pl.BlockSpec((1, 1, cout), lambda i: (0, 0, 0)),
        ],
        out_specs=pl.BlockSpec((nb, cout, hw), lambda i: (i, 0, 0)),
        scratch_shapes=[
            pltpu.VMEM((nb, hp + 2 * r, wp + 2 * r, cout), jnp.float32),
        ],
        compiler_params=pltpu.CompilerParams(
            dimension_semantics=("parallel",),
            vmem_limit_bytes=vmem_limit),
    )(patches1, w1_r, g1, b1, w2_r, g2, b2)

    # (N, Cout, Hp*Wp) -> NCHW: a pure reshape, no data movement.
    return out.reshape(n, cout, hp, wp)


def _reference(x_nchw, params):
    """Pure-JAX (XLA) reference matching the PyTorch forward."""
    n, c, h, w = x_nchw.shape
    xp = x_nchw.reshape(n, c, h // 2, 2, w // 2, 2).max(axis=(3, 5))

    def conv(x, wgt):
        pad = wgt.shape[2] // 2
        return jax.lax.conv_general_dilated(
            x, wgt, window_strides=(1, 1),
            padding=((pad, pad), (pad, pad)),
            dimension_numbers=("NCHW", "OIHW", "NCHW"))

    def gn(x, g, b, eps=1e-5):
        mean = x.mean(axis=(2, 3), keepdims=True)
        var = ((x - mean) ** 2).mean(axis=(2, 3), keepdims=True)
        return (x - mean) * jax.lax.rsqrt(var + eps) * g[None, :, None, None] \
            + b[None, :, None, None]

    y = jnp.maximum(gn(conv(xp, params["w1"]), params["g1"], params["b1"]), 0.0)
    y = jnp.maximum(gn(conv(y, params["w2"]), params["g2"], params["b2"]), 0.0)
    return y


if __name__ == "__main__":
    key = jax.random.PRNGKey(0)
    kx, k1, k2, kg1, kb1, kg2, kb2 = jax.random.split(key, 7)

    N, Cin, H, W = 2, 4, 16, 16
    Cout, K = 8, 3

    x = jax.random.normal(kx, (N, Cin, H, W), jnp.float32)
    params = {
        "w1": jax.random.normal(k1, (Cout, Cin, K, K), jnp.float32)
              * (1.0 / (Cin * K * K) ** 0.5),
        "w2": jax.random.normal(k2, (Cout, Cout, K, K), jnp.float32)
              * (1.0 / (Cout * K * K) ** 0.5),
        "g1": 1.0 + 0.1 * jax.random.normal(kg1, (Cout,), jnp.float32),
        "b1": 0.1 * jax.random.normal(kb1, (Cout,), jnp.float32),
        "g2": 1.0 + 0.1 * jax.random.normal(kg2, (Cout,), jnp.float32),
        "b2": 0.1 * jax.random.normal(kb2, (Cout,), jnp.float32),
    }

    ref = jax.block_until_ready(_reference(x, params))

    # f32 matmul path: tight tolerance (exact algorithmic match).
    out_f32 = jax.block_until_ready(
        downsampling_unit(x, params, matmul_dtype=jnp.float32))
    assert out_f32.shape == (N, Cout, H // 2, W // 2), out_f32.shape
    err_f32 = float(jnp.max(jnp.abs(out_f32 - ref)))
    assert err_f32 < 1e-4, f"f32 path max abs error too large: {err_f32}"

    # Default bf16 matmul-operand path: looser tolerance (bf16 MXU operands,
    # f32 accumulation and f32 GroupNorm/ReLU).
    out_bf16 = jax.block_until_ready(downsampling_unit(x, params))
    assert out_bf16.shape == (N, Cout, H // 2, W // 2), out_bf16.shape
    err_bf16 = float(jnp.max(jnp.abs(out_bf16 - ref)))
    assert err_bf16 < 1e-1, f"bf16 path max abs error too large: {err_bf16}"

    print("KERNEL_OK")
</pallas_src>

<mosaic_0001>
module attributes {stable_mosaic.version = 11 : i64} {
  func.func @_downsampling_unit_kernel(%arg0: i32, %arg1: memref<128x36xf32, #tpu.memory_space<vmem>>, %arg2: memref<36x8xf32, #tpu.memory_space<vmem>>, %arg3: memref<1x1x8xf32, #tpu.memory_space<vmem>>, %arg4: memref<1x1x8xf32, #tpu.memory_space<vmem>>, %arg5: memref<72x8xf32, #tpu.memory_space<vmem>>, %arg6: memref<1x1x8xf32, #tpu.memory_space<vmem>>, %arg7: memref<1x1x8xf32, #tpu.memory_space<vmem>>, %arg8: memref<2x8x64xf32, #tpu.memory_space<vmem>>, %arg9: memref<2x10x10x8xf32, #tpu.memory_space<vmem>>) attributes {dimension_semantics = [#tpu.dimension_semantics<parallel>], iteration_bounds = array<i64: 1>, scalar_prefetch = 0 : i64, scratch_operands = 1 : i64, tpu.core_type = #tpu.core_type<tc>, window_params = [{transform_indices = @transform_0, window_bounds = array<i64: 128, 36>}, {pipeline_mode = #tpu.pipeline_mode<synchronous>, transform_indices = @transform_1, window_bounds = array<i64: 36, 8>}, {pipeline_mode = #tpu.pipeline_mode<synchronous>, transform_indices = @transform_2, window_bounds = array<i64: 1, 1, 8>}, {pipeline_mode = #tpu.pipeline_mode<synchronous>, transform_indices = @transform_3, window_bounds = array<i64: 1, 1, 8>}, {pipeline_mode = #tpu.pipeline_mode<synchronous>, transform_indices = @transform_4, window_bounds = array<i64: 72, 8>}, {pipeline_mode = #tpu.pipeline_mode<synchronous>, transform_indices = @transform_5, window_bounds = array<i64: 1, 1, 8>}, {pipeline_mode = #tpu.pipeline_mode<synchronous>, transform_indices = @transform_6, window_bounds = array<i64: 1, 1, 8>}, {transform_indices = @transform_7, window_bounds = array<i64: 2, 8, 64>}]} {
    %c0 = arith.constant 0 : index
    %c0_0 = arith.constant 0 : index
    %0 = vector.load %arg1[%c0, %c0_0] : memref<128x36xf32, #tpu.memory_space<vmem>>, vector<128x36xf32>
    %c0_1 = arith.constant 0 : index
    %c0_2 = arith.constant 0 : index
    %1 = vector.load %arg2[%c0_1, %c0_2] : memref<36x8xf32, #tpu.memory_space<vmem>>, vector<36x8xf32>
    %cst = arith.constant dense<0.000000e+00> : vector<128x8xf32>
    %2 = tpu.matmul %0, %1, %cst {dimension_numbers = #tpu.dot_dimension_numbers<[1], [0], [0], [1], [0, 0, 1, 1], [], []>} : vector<128x36xf32>, vector<36x8xf32>, vector<128x8xf32> -> vector<128x8xf32>
    %c0_3 = arith.constant 0 : index
    %c0_4 = arith.constant 0 : index
    %c0_5 = arith.constant 0 : index
    %3 = vector.load %arg3[%c0_3, %c0_4, %c0_5] : memref<1x1x8xf32, #tpu.memory_space<vmem>>, vector<1x1x8xf32>
    %c0_6 = arith.constant 0 : index
    %c0_7 = arith.constant 0 : index
    %c0_8 = arith.constant 0 : index
    %4 = vector.load %arg4[%c0_6, %c0_7, %c0_8] : memref<1x1x8xf32, #tpu.memory_space<vmem>>, vector<1x1x8xf32>
    %5 = vector.shape_cast %2 : vector<128x8xf32> to vector<2x64x8xf32>
    %cst_9 = arith.constant dense<0.000000e+00> : vector<2x8xf32>
    %6 = vector.multi_reduction <add>, %5, %cst_9 [1] : vector<2x64x8xf32> to vector<2x8xf32>
    %7 = vector.shape_cast %6 : vector<2x8xf32> to vector<2x1x8xf32>
    %cst_10 = arith.constant 1.562500e-02 : f32
    %8 = vector.broadcast %cst_10 : f32 to vector<2x1x8xf32>
    %9 = arith.mulf %7, %8 : vector<2x1x8xf32>
    %10 = vector.broadcast %9 : vector<2x1x8xf32> to vector<2x64x8xf32>
    %11 = arith.subf %5, %10 : vector<2x64x8xf32>
    %12 = arith.mulf %11, %11 : vector<2x64x8xf32>
    %cst_11 = arith.constant dense<0.000000e+00> : vector<2x8xf32>
    %13 = vector.multi_reduction <add>, %12, %cst_11 [1] : vector<2x64x8xf32> to vector<2x8xf32>
    %14 = vector.shape_cast %13 : vector<2x8xf32> to vector<2x1x8xf32>
    %cst_12 = arith.constant 1.562500e-02 : f32
    %15 = vector.broadcast %cst_12 : f32 to vector<2x1x8xf32>
    %16 = arith.mulf %14, %15 : vector<2x1x8xf32>
    %cst_13 = arith.constant 9.99999974E-6 : f32
    %17 = vector.broadcast %cst_13 : f32 to vector<2x1x8xf32>
    %18 = arith.addf %16, %17 : vector<2x1x8xf32>
    %19 = math.rsqrt %18 : vector<2x1x8xf32>
    %20 = vector.broadcast %3 : vector<1x1x8xf32> to vector<2x1x8xf32>
    %21 = arith.mulf %20, %19 : vector<2x1x8xf32>
    %22 = vector.broadcast %21 : vector<2x1x8xf32> to vector<2x64x8xf32>
    %23 = arith.mulf %11, %22 : vector<2x64x8xf32>
    %24 = vector.broadcast %4 : vector<1x1x8xf32> to vector<2x64x8xf32>
    %25 = arith.addf %23, %24 : vector<2x64x8xf32>
    %cst_14 = arith.constant 0.000000e+00 : f32
    %26 = vector.broadcast %cst_14 : f32 to vector<2x64x8xf32>
    %27 = arith.maximumf %25, %26 : vector<2x64x8xf32>
    %cst_15 = arith.constant 0.000000e+00 : f32
    %28 = vector.broadcast %cst_15 : f32 to vector<2x1x10x8xf32>
    %c0_16 = arith.constant 0 : index
    %c0_17 = arith.constant 0 : index
    %c0_18 = arith.constant 0 : index
    %c0_19 = arith.constant 0 : index
    %29 = vector.load %arg9[%c0_16, %c0_17, %c0_18, %c0_19] : memref<2x10x10x8xf32, #tpu.memory_space<vmem>>, vector<2x1x10x8xf32>
    tpu.vector_store %arg9[%c0_16, %c0_17, %c0_18, %c0_19], %28 {strides = array<i32>} : memref<2x10x10x8xf32, #tpu.memory_space<vmem>>, vector<2x1x10x8xf32>,
    %cst_20 = arith.constant 0.000000e+00 : f32
    %30 = vector.broadcast %cst_20 : f32 to vector<2x1x10x8xf32>
    %c0_21 = arith.constant 0 : index
    %c9 = arith.constant 9 : index
    %c0_22 = arith.constant 0 : index
    %c0_23 = arith.constant 0 : index
    %31 = vector.load %arg9[%c0_21, %c9, %c0_22, %c0_23] : memref<2x10x10x8xf32, #tpu.memory_space<vmem>>, vector<2x1x10x8xf32>
    tpu.vector_store %arg9[%c0_21, %c9, %c0_22, %c0_23], %30 {strides = array<i32>} : memref<2x10x10x8xf32, #tpu.memory_space<vmem>>, vector<2x1x10x8xf32>,
    %cst_24 = arith.constant 0.000000e+00 : f32
    %32 = vector.broadcast %cst_24 : f32 to vector<2x8x1x8xf32>
    %c0_25 = arith.constant 0 : index
    %c1 = arith.constant 1 : index
    %c0_26 = arith.constant 0 : index
    %c0_27 = arith.constant 0 : index
    %33 = vector.load %arg9[%c0_25, %c1, %c0_26, %c0_27] : memref<2x10x10x8xf32, #tpu.memory_space<vmem>>, vector<2x8x1x8xf32>
    tpu.vector_store %arg9[%c0_25, %c1, %c0_26, %c0_27], %32 {strides = array<i32>} : memref<2x10x10x8xf32, #tpu.memory_space<vmem>>, vector<2x8x1x8xf32>,
    %cst_28 = arith.constant 0.000000e+00 : f32
    %34 = vector.broadcast %cst_28 : f32 to vector<2x8x1x8xf32>
    %c0_29 = arith.constant 0 : index
    %c1_30 = arith.constant 1 : index
    %c9_31 = arith.constant 9 : index
    %c0_32 = arith.constant 0 : index
    %35 = vector.load %arg9[%c0_29, %c1_30, %c9_31, %c0_32] : memref<2x10x10x8xf32, #tpu.memory_space<vmem>>, vector<2x8x1x8xf32>
    tpu.vector_store %arg9[%c0_29, %c1_30, %c9_31, %c0_32], %34 {strides = array<i32>} : memref<2x10x10x8xf32, #tpu.memory_space<vmem>>, vector<2x8x1x8xf32>,
    %36 = vector.shape_cast %27 : vector<2x64x8xf32> to vector<2x8x8x8xf32>
    %c0_33 = arith.constant 0 : index
    %c1_34 = arith.constant 1 : index
    %c1_35 = arith.constant 1 : index
    %c0_36 = arith.constant 0 : index
    %37 = vector.load %arg9[%c0_33, %c1_34, %c1_35, %c0_36] : memref<2x10x10x8xf32, #tpu.memory_space<vmem>>, vector<2x8x8x8xf32>
    tpu.vector_store %arg9[%c0_33, %c1_34, %c1_35, %c0_36], %36 {strides = array<i32>} : memref<2x10x10x8xf32, #tpu.memory_space<vmem>>, vector<2x8x8x8xf32>,
    %c0_37 = arith.constant 0 : index
    %c0_38 = arith.constant 0 : index
    %38 = vector.load %arg5[%c0_37, %c0_38] : memref<72x8xf32, #tpu.memory_space<vmem>>, vector<72x8xf32>
    %c0_39 = arith.constant 0 : index
    %c0_40 = arith.constant 0 : index
    %c0_41 = arith.constant 0 : index
    %c0_42 = arith.constant 0 : index
    %39 = vector.load %arg9[%c0_39, %c0_40, %c0_41, %c0_42] : memref<2x10x10x8xf32, #tpu.memory_space<vmem>>, vector<2x8x8x8xf32>
    %c0_43 = arith.constant 0 : index
    %c0_44 = arith.constant 0 : index
    %c1_45 = arith.constant 1 : index
    %c0_46 = arith.constant 0 : index
    %40 = vector.load %arg9[%c0_43, %c0_44, %c1_45, %c0_46] : memref<2x10x10x8xf32, #tpu.memory_space<vmem>>, vector<2x8x8x8xf32>
    %c0_47 = arith.constant 0 : index
    %c0_48 = arith.constant 0 : index
    %c2 = arith.constant 2 : index
    %c0_49 = arith.constant 0 : index
    %41 = vector.load %arg9[%c0_47, %c0_48, %c2, %c0_49] : memref<2x10x10x8xf32, #tpu.memory_space<vmem>>, vector<2x8x8x8xf32>
    %c0_50 = arith.constant 0 : index
    %c1_51 = arith.constant 1 : index
    %c0_52 = arith.constant 0 : index
    %c0_53 = arith.constant 0 : index
    %42 = vector.load %arg9[%c0_50, %c1_51, %c0_52, %c0_53] : memref<2x10x10x8xf32, #tpu.memory_space<vmem>>, vector<2x8x8x8xf32>
    %c0_54 = arith.constant 0 : index
    %c1_55 = arith.constant 1 : index
    %c1_56 = arith.constant 1 : index
    %c0_57 = arith.constant 0 : index
    %43 = vector.load %arg9[%c0_54, %c1_55, %c1_56, %c0_57] : memref<2x10x10x8xf32, #tpu.memory_space<vmem>>, vector<2x8x8x8xf32>
    %c0_58 = arith.constant 0 : index
    %c1_59 = arith.constant 1 : index
    %c2_60 = arith.constant 2 : index
    %c0_61 = arith.constant 0 : index
    %44 = vector.load %arg9[%c0_58, %c1_59, %c2_60, %c0_61] : memref<2x10x10x8xf32, #tpu.memory_space<vmem>>, vector<2x8x8x8xf32>
    %c0_62 = arith.constant 0 : index
    %c2_63 = arith.constant 2 : index
    %c0_64 = arith.constant 0 : index
    %c0_65 = arith.constant 0 : index
    %45 = vector.load %arg9[%c0_62, %c2_63, %c0_64, %c0_65] : memref<2x10x10x8xf32, #tpu.memory_space<vmem>>, vector<2x8x8x8xf32>
    %c0_66 = arith.constant 0 : index
    %c2_67 = arith.constant 2 : index
    %c1_68 = arith.constant 1 : index
    %c0_69 = arith.constant 0 : index
    %46 = vector.load %arg9[%c0_66, %c2_67, %c1_68, %c0_69] : memref<2x10x10x8xf32, #tpu.memory_space<vmem>>, vector<2x8x8x8xf32>
    %c0_70 = arith.constant 0 : index
    %c2_71 = arith.constant 2 : index
    %c2_72 = arith.constant 2 : index
    %c0_73 = arith.constant 0 : index
    %47 = vector.load %arg9[%c0_70, %c2_71, %c2_72, %c0_73] : memref<2x10x10x8xf32, #tpu.memory_space<vmem>>, vector<2x8x8x8xf32>
    %48 = tpu.concatenate %39, %40, %41, %42, %43, %44, %45, %46, %47 in 3 : vector<2x8x8x8xf32>, vector<2x8x8x8xf32>, vector<2x8x8x8xf32>, vector<2x8x8x8xf32>, vector<2x8x8x8xf32>, vector<2x8x8x8xf32>, vector<2x8x8x8xf32>, vector<2x8x8x8xf32>, vector<2x8x8x8xf32> -> vector<2x8x8x72xf32>
    %49 = vector.shape_cast %48 : vector<2x8x8x72xf32> to vector<128x72xf32>
    %cst_74 = arith.constant dense<0.000000e+00> : vector<128x8xf32>
    %50 = tpu.matmul %49, %38, %cst_74 {dimension_numbers = #tpu.dot_dimension_numbers<[1], [0], [0], [1], [0, 0, 1, 1], [], []>} : vector<128x72xf32>, vector<72x8xf32>, vector<128x8xf32> -> vector<128x8xf32>
    %c0_75 = arith.constant 0 : index
    %c0_76 = arith.constant 0 : index
    %c0_77 = arith.constant 0 : index
    %51 = vector.load %arg6[%c0_75, %c0_76, %c0_77] : memref<1x1x8xf32, #tpu.memory_space<vmem>>, vector<1x1x8xf32>
    %c0_78 = arith.constant 0 : index
    %c0_79 = arith.constant 0 : index
    %c0_80 = arith.constant 0 : index
    %52 = vector.load %arg7[%c0_78, %c0_79, %c0_80] : memref<1x1x8xf32, #tpu.memory_space<vmem>>, vector<1x1x8xf32>
    %53 = vector.shape_cast %50 : vector<128x8xf32> to vector<2x64x8xf32>
    %cst_81 = arith.constant dense<0.000000e+00> : vector<2x8xf32>
    %54 = vector.multi_reduction <add>, %53, %cst_81 [1] : vector<2x64x8xf32> to vector<2x8xf32>
    %55 = vector.shape_cast %54 : vector<2x8xf32> to vector<2x1x8xf32>
    %cst_82 = arith.constant 1.562500e-02 : f32
    %56 = vector.broadcast %cst_82 : f32 to vector<2x1x8xf32>
    %57 = arith.mulf %55, %56 : vector<2x1x8xf32>
    %58 = vector.broadcast %57 : vector<2x1x8xf32> to vector<2x64x8xf32>
    %59 = arith.subf %53, %58 : vector<2x64x8xf32>
    %60 = arith.mulf %59, %59 : vector<2x64x8xf32>
    %cst_83 = arith.constant dense<0.000000e+00> : vector<2x8xf32>
    %61 = vector.multi_reduction <add>, %60, %cst_83 [1] : vector<2x64x8xf32> to vector<2x8xf32>
    %62 = vector.shape_cast %61 : vector<2x8xf32> to vector<2x1x8xf32>
    %cst_84 = arith.constant 1.562500e-02 : f32
    %63 = vector.broadcast %cst_84 : f32 to vector<2x1x8xf32>
    %64 = arith.mulf %62, %63 : vector<2x1x8xf32>
    %cst_85 = arith.constant 9.99999974E-6 : f32
    %65 = vector.broadcast %cst_85 : f32 to vector<2x1x8xf32>
    %66 = arith.addf %64, %65 : vector<2x1x8xf32>
    %67 = math.rsqrt %66 : vector<2x1x8xf32>
    %68 = vector.broadcast %51 : vector<1x1x8xf32> to vector<2x1x8xf32>
    %69 = arith.mulf %68, %67 : vector<2x1x8xf32>
    %70 = vector.broadcast %69 : vector<2x1x8xf32> to vector<2x64x8xf32>
    %71 = arith.mulf %59, %70 : vector<2x64x8xf32>
    %72 = vector.broadcast %52 : vector<1x1x8xf32> to vector<2x64x8xf32>
    %73 = arith.addf %71, %72 : vector<2x64x8xf32>
    %cst_86 = arith.constant 0.000000e+00 : f32
    %74 = vector.broadcast %cst_86 : f32 to vector<2x64x8xf32>
    %75 = arith.maximumf %73, %74 : vector<2x64x8xf32>
    %76 = vector.extract_strided_slice %75 {offsets = [0, 0, 0], sizes = [1, 64, 8], strides = [1, 1, 1]} : vector<2x64x8xf32> to vector<1x64x8xf32>
    %77 = vector.shape_cast %76 : vector<1x64x8xf32> to vector<64x8xf32>
    %78 = tpu.transpose %77, [1, 0] : vector<64x8xf32> -> vector<8x64xf32>
    %c0_87 = arith.constant 0 : index
    %c0_88 = arith.constant 0 : index
    %c0_89 = arith.constant 0 : index
    %79 = vector.load %arg8[%c0_87, %c0_88, %c0_89] : memref<2x8x64xf32, #tpu.memory_space<vmem>>, vector<1x8x64xf32>
    %80 = vector.shape_cast %79 : vector<1x8x64xf32> to vector<8x64xf32>
    %81 = vector.shape_cast %78 : vector<8x64xf32> to vector<1x8x64xf32>
    tpu.vector_store %arg8[%c0_87, %c0_88, %c0_89], %81 {strides = array<i32>} : memref<2x8x64xf32, #tpu.memory_space<vmem>>, vector<1x8x64xf32>,
    %82 = vector.extract_strided_slice %75 {offsets = [1, 0, 0], sizes = [1, 64, 8], strides = [1, 1, 1]} : vector<2x64x8xf32> to vector<1x64x8xf32>
    %83 = vector.shape_cast %82 : vector<1x64x8xf32> to vector<64x8xf32>
    %84 = tpu.transpose %83, [1, 0] : vector<64x8xf32> -> vector<8x64xf32>
    %c1_90 = arith.constant 1 : index
    %c0_91 = arith.constant 0 : index
    %c0_92 = arith.constant 0 : index
    %85 = vector.load %arg8[%c1_90, %c0_91, %c0_92] : memref<2x8x64xf32, #tpu.memory_space<vmem>>, vector<1x8x64xf32>
    %86 = vector.shape_cast %85 : vector<1x8x64xf32> to vector<8x64xf32>
    %87 = vector.shape_cast %84 : vector<8x64xf32> to vector<1x8x64xf32>
    tpu.vector_store %arg8[%c1_90, %c0_91, %c0_92], %87 {strides = array<i32>} : memref<2x8x64xf32, #tpu.memory_space<vmem>>, vector<1x8x64xf32>,
    return
  }
  func.func @transform_0(%arg0: i32) -> (i32, i32) {
    %c0_i32 = arith.constant 0 : i32
    %c0_i32_0 = arith.constant 0 : i32
    return %arg0, %c0_i32 : i32, i32
  }
  func.func @transform_1(%arg0: i32) -> (i32, i32) {
    %c0_i32 = arith.constant 0 : i32
    %c0_i32_0 = arith.constant 0 : i32
    %c0_i32_1 = arith.constant 0 : i32
    return %c0_i32, %c0_i32_0 : i32, i32
  }
  func.func @transform_2(%arg0: i32) -> (i32, i32, i32) {
    %c0_i32 = arith.constant 0 : i32
    %c0_i32_0 = arith.constant 0 : i32
    %c0_i32_1 = arith.constant 0 : i32
    %c0_i32_2 = arith.constant 0 : i32
    return %c0_i32, %c0_i32_0, %c0_i32_1 : i32, i32, i32
  }
  func.func @transform_3(%arg0: i32) -> (i32, i32, i32) {
    %c0_i32 = arith.constant 0 : i32
    %c0_i32_0 = arith.constant 0 : i32
    %c0_i32_1 = arith.constant 0 : i32
    %c0_i32_2 = arith.constant 0 : i32
    return %c0_i32, %c0_i32_0, %c0_i32_1 : i32, i32, i32
  }
  func.func @transform_4(%arg0: i32) -> (i32, i32) {
    %c0_i32 = arith.constant 0 : i32
    %c0_i32_0 = arith.constant 0 : i32
    %c0_i32_1 = arith.constant 0 : i32
    return %c0_i32, %c0_i32_0 : i32, i32
  }
  func.func @transform_5(%arg0: i32) -> (i32, i32, i32) {
    %c0_i32 = arith.constant 0 : i32
    %c0_i32_0 = arith.constant 0 : i32
    %c0_i32_1 = arith.constant 0 : i32
    %c0_i32_2 = arith.constant 0 : i32
    return %c0_i32, %c0_i32_0, %c0_i32_1 : i32, i32, i32
  }
  func.func @transform_6(%arg0: i32) -> (i32, i32, i32) {
    %c0_i32 = arith.constant 0 : i32
    %c0_i32_0 = arith.constant 0 : i32
    %c0_i32_1 = arith.constant 0 : i32
    %c0_i32_2 = arith.constant 0 : i32
    return %c0_i32, %c0_i32_0, %c0_i32_1 : i32, i32, i32
  }
  func.func @transform_7(%arg0: i32) -> (i32, i32, i32) {
    %c0_i32 = arith.constant 0 : i32
    %c0_i32_0 = arith.constant 0 : i32
    %c0_i32_1 = arith.constant 0 : i32
    return %arg0, %c0_i32, %c0_i32_0 : i32, i32, i32
  }
}

</mosaic_0001>

<bundles_post_ra>
// kernel: tpu_custom_call.1
= control target key start
LH: loop header
LB: loop body
LE: loop exit
PB: predicated region body
PF: predicated region fallthrough
CT: control target
= control target key end

     0   :  { %vm48_vm0 = vcmask 293888   ;;  %vm97_vm1 = vcmask 1043456   ;;  %s2875_s0 = inlined_call_operand.vmem [shape: f32[128,36], index: 0, kind: input, shape index: {}]   ;;  %s2876_s1 = inlined_call_operand.vmem [shape: f32[36,8], index: 1, kind: input, shape index: {}]   ;;  %s2877_s2 = inlined_call_operand.vmem [shape: f32[1,1,8], index: 2, kind: input, shape index: {}]   ;;  %s2878_s3 = inlined_call_operand.vmem [shape: f32[1,1,8], index: 3, kind: input, shape index: {}]   ;;  %s2879_s4 = inlined_call_operand.vmem [shape: f32[72,8], index: 4, kind: input, shape index: {}]   ;;  %s2880_s5 = inlined_call_operand.vmem [shape: f32[1,1,8], index: 5, kind: input, shape index: {}]   ;;  %s2881_s6 = inlined_call_operand.vmem [shape: f32[1,1,8], index: 6, kind: input, shape index: {}]   ;;  %s2882_s7 = inlined_call_operand.hbm [shape: f32[2,8,64], index: 7, kind: output, shape index: {}]  }
   0x1   :  { %v43_v0 = vld [vmem:[%s2876_s1] sm:$0xff]  ;;  %v44_v1 = vld [vmem:[%s2876_s1 + $0x8] sm:$0xff]  ;;  %v45_v2 = vld [vmem:[%s2876_s1 + $0x10] sm:$0xff] }
   0x2   :  { %v1930_v3 = vpack.c.bf16 %v44_v1, %v43_v0  ;;  %v46_v4 = vld [vmem:[%s2876_s1 + $0x18] sm:$0xff]  ;;  %v27_v5 = vld [vmem:[%s2875_s0] sm:$0xff] }
   0x3   :  { %v1934_v6 = vpack.c.bf16 %v46_v4, %v45_v2  ;;  %1864 = vmatprep.mubr.msk.f32.mxu0 %vm48_vm0, %v27_v5  ;;  %v47_v7 = vld [vmem:[%s2876_s1 + $0x20] sm:$0xf] }
   0x4   :  { %1931 = vmatprep.subr.bf16.mxu0 %v1930_v3 }
   0x5   :  { %1933 = vmatpush3.bf16.msra.mxu0 %v1930_v3 }
   0x6   :  { %1935 = vmatprep.subr.bf16.mxu0 %v1934_v6 }
   0x7   :  { %12 = vsyncpa [#allocation4], 0  ;;  %v28_v8 = vld [vmem:[%s2875_s0 + $0x8] sm:$0xff]  ;;  %v29_v9 = vld [vmem:[%s2875_s0 + $0x10] sm:$0xff]  ;;  %vm248_vm2 = vcmask 64512   ;;  %vm442_vm3 = vcmask 58368  }
   0x8   :  { %v30_v10 = vld [vmem:[%s2875_s0 + $0x18] sm:$0xff]  ;;  %v31_v11 = vld [vmem:[%s2875_s0 + $0x20] sm:$0xff]  ;;  %v32_v12 = vld [vmem:[%s2875_s0 + $0x28] sm:$0xff]  ;;  %v2007_v23 = vmov 0.0   ;;  %s2008_s1 = smov 16   ;;  %s2010_s19 = smov 48  }
   0x9   :  { %1937 = vmatpush3.bf16.msra.mxu0 %v1934_v6  ;;  %v33_v13 = vld [vmem:[%s2875_s0 + $0x30] sm:$0xff]  ;;  %v34_v14 = vld [vmem:[%s2875_s0 + $0x38] sm:$0xff]  ;;  %v35_v15 = vld [vmem:[%s2875_s0 + $0x40] sm:$0xff]  ;;  %444 = vst.msk [vmem:[#allocation2 + $0xa0] sm:$0xff] %vm248_vm2, %v2007_v23  ;;  %s2011_s20 = smov 56   ;;  %vm452_vm4 = vcmask 57344  }
   0xa   :  { %1862 = vmatprep.subr.msk.mxu0 %vm97_vm1, %v47_v7  ;;  %v36_v16 = vld [vmem:[%s2875_s0 + $0x48] sm:$0xff]  ;;  %v37_v17 = vld [vmem:[%s2875_s0 + $0x50] sm:$0xff]  ;;  %v38_v18 = vld [vmem:[%s2875_s0 + $0x58] sm:$0xff]  ;;  %445 = vst.msk [vmem:[#allocation2 + $0xa8] sm:$0x3] %vm442_vm3, %v2007_v23  ;;  %s2012_s21 = smov 64  }
   0xb   :  { %v39_v19 = vld [vmem:[%s2875_s0 + $0x60] sm:$0xff]  ;;  %v40_v20 = vld [vmem:[%s2875_s0 + $0x68] sm:$0xff]  ;;  %v41_v21 = vld [vmem:[%s2875_s0 + $0x70] sm:$0xff]  ;;  %441 = vst.msk [vmem:[#allocation2] sm:$0xff] %vm248_vm2, %v2007_v23  ;;  %s2015_s26 = smov 40   ;;  %vm1200_vm5 = vcmask 195584  }
   0xc   :  { %v42_v22 = vld [vmem:[%s2875_s0 + $0x78] sm:$0xff]  ;;  %443 = vst.msk [vmem:[#allocation2 + $0x8] sm:$0x3] %vm442_vm3, %v2007_v23  ;;  %448 = vst.msk [vmem:[#allocation2 + $0x98] sm:$0x3] %vm442_vm3, %v2007_v23  ;;  %s2009_s0 = smov 8  }
   0xd   :  { %1863 = vmatpush3.msk.msra.mxu0 %vm97_vm1, %v47_v7  ;;  %447 = vst.msk [vmem:[#allocation2 + $0x90] sm:$0xff] %vm248_vm2, %v2007_v23  ;;  %449 = vst.msk [vmem:[#allocation2 + $0x130] sm:$0xff] %vm248_vm2, %v2007_v23  ;;  %vm1183_vm6 = vcmask 130048   ;;  %vm1217_vm7 = vcmask 261120   ;;  %vm1234_vm8 = vcmask 326656   ;;  %vm1251_vm9 = vcmask 392192  }
   0xe   :  { %1865 = vmatmul.mubr.msk.f32.vlgmr.msra.gmra.mrb[0].mxu0 %vm48_vm0, %v28_v8  ;;  %450 = vst.msk [vmem:[#allocation2 + $0x138] sm:$0x3] %vm442_vm3, %v2007_v23  ;;  %vm1268_vm10 = vcmask 457728   ;;  %vm1285_vm11 = vcmask 523264   ;;  %vm1302_vm12 = vcmask 588800  }
   0xf   :  { %1867 = vmatprep.mubr.msk.f32.mxu0 %vm48_vm0, %v29_v9  ;;  %470 = vst.msk [vmem:[#allocation2 + $0x29] sm:$0x1] %vm452_vm4, %v2007_v23  ;;  %453 = vst.msk [vmem:[#allocation2 + $0x10] sm:$0x1] %vm452_vm4, %v2007_v23 }
  0x10   :  { %454 = vst.msk [vmem:[#allocation2 + $0x20] sm:$0x1] %vm452_vm4, %v2007_v23  ;;  %455 = vst.msk [vmem:[#allocation2 + $0x30] sm:$0x1] %vm452_vm4, %v2007_v23 }
  0x11   :  { %v550_v24 = vld [vmem:[#allocation2 + $0xa2] sm:$0xff]  ;;  %456 = vst.msk [vmem:[#allocation2 + $0x40] sm:$0x1] %vm452_vm4, %v2007_v23  ;;  %457 = vst.msk [vmem:[#allocation2 + $0x50] sm:$0x1] %vm452_vm4, %v2007_v23 }
  0x12   :  { %1868 = vmatmul.mubr.msk.f32.gmra.mrb[2].mxu0 %vm48_vm0, %v30_v10  ;;  %751 = vrot.lane.b32.xlu1 %v550_v24, %s2008_s1  ;;  %v534_v25 = vld [vmem:[#allocation2 + $0xa1] sm:$0xff]  ;;  %458 = vst.msk [vmem:[#allocation2 + $0x60] sm:$0x1] %vm452_vm4, %v2007_v23  ;;  %459 = vst.msk [vmem:[#allocation2 + $0x70] sm:$0x1] %vm452_vm4, %v2007_v23 }
  0x13   :  { %1870 = vmatprep.mubr.msk.f32.mxu0 %vm48_vm0, %v31_v11  ;;  %687 = vrot.lane.b32.xlu0 %v534_v25, %s2009_s0  ;;  %v526_v27 = vld [vmem:[#allocation2 + $0x1] sm:$0xff]  ;;  %460 = vst.msk [vmem:[#allocation2 + $0x80] sm:$0x1] %vm452_vm4, %v2007_v23  ;;  %461 = vst.msk [vmem:[#allocation2 + $0xb0] sm:$0x1] %vm452_vm4, %v2007_v23 }
  0x14   :  { %v614_v26 = vld [vmem:[#allocation2 + $0x90] sm:$0xff]  ;;  %v542_v29 = vld [vmem:[#allocation2 + $0x2] sm:$0xff]  ;;  %462 = vst.msk [vmem:[#allocation2 + $0xc0] sm:$0x1] %vm452_vm4, %v2007_v23  ;;  %463 = vst.msk [vmem:[#allocation2 + $0xd0] sm:$0x1] %vm452_vm4, %v2007_v23 }
  0x15   :  { %v630_v28 = vld [vmem:[#allocation2 + $0x91] sm:$0xff]  ;;  %464 = vst.msk [vmem:[#allocation2 + $0xe0] sm:$0x1] %vm452_vm4, %v2007_v23  ;;  %465 = vst.msk [vmem:[#allocation2 + $0xf0] sm:$0x1] %vm452_vm4, %v2007_v23 }
  0x16   :  { %1871 = vmatmul.mubr.msk.f32.gmra.mrb[4].mxu0 %vm48_vm0, %v32_v12  ;;  %1005 = vrot.lane.b32.xlu1 %v614_v26, %s2010_s19  ;;  %v622_v30 = vld [vmem:[#allocation2 + $0x130] sm:$0xff]  ;;  %466 = vst.msk [vmem:[#allocation2 + $0x100] sm:$0x1] %vm452_vm4, %v2007_v23  ;;  %467 = vst.msk [vmem:[#allocation2 + $0x110] sm:$0x1] %vm452_vm4, %v2007_v23 }
  0x17   :  { %1873 = vmatprep.mubr.msk.f32.mxu0 %vm48_vm0, %v33_v13  ;;  %671 = vrot.lane.b32.xlu0 %v526_v27, %s2009_s0  ;;  %468 = vst.msk [vmem:[#allocation2 + $0x120] sm:$0x1] %vm452_vm4, %v2007_v23  ;;  %469 = vst.msk [vmem:[#allocation2 + $0x19] sm:$0x1] %vm452_vm4, %v2007_v23  ;;  %v638_v31 = vld [vmem:[#allocation2 + $0x131] sm:$0xff] }
  0x18   :  { %471 = vst.msk [vmem:[#allocation2 + $0x39] sm:$0x1] %vm452_vm4, %v2007_v23  ;;  %472 = vst.msk [vmem:[#allocation2 + $0x49] sm:$0x1] %vm452_vm4, %v2007_v23  ;;  %v646_v32 = vld [vmem:[#allocation2 + $0x92] sm:$0xff] }
  0x19   :  { %473 = vst.msk [vmem:[#allocation2 + $0x59] sm:$0x1] %vm452_vm4, %v2007_v23  ;;  %474 = vst.msk [vmem:[#allocation2 + $0x69] sm:$0x1] %vm452_vm4, %v2007_v23 }
  0x1a   :  { %1874 = vmatmul.mubr.msk.f32.gmra.mrb[6].mxu0 %vm48_vm0, %v34_v14  ;;  %1069 = vrot.lane.b32.xlu1 %v630_v28, %s2011_s20  ;;  %475 = vst.msk [vmem:[#allocation2 + $0x79] sm:$0x1] %vm452_vm4, %v2007_v23  ;;  %476 = vst.msk [vmem:[#allocation2 + $0x89] sm:$0x1] %vm452_vm4, %v2007_v23 }
  0x1b   :  { %1876 = vmatprep.mubr.msk.f32.mxu0 %vm48_vm0, %v35_v15  ;;  %735 = vrot.lane.b32.xlu0 %v542_v29, %s2008_s1  ;;  %477 = vst.msk [vmem:[#allocation2 + $0xb9] sm:$0x1] %vm452_vm4, %v2007_v23  ;;  %478 = vst.msk [vmem:[#allocation2 + $0xc9] sm:$0x1] %vm452_vm4, %v2007_v23 }
  0x1c   :  { %479 = vst.msk [vmem:[#allocation2 + $0xd9] sm:$0x1] %vm452_vm4, %v2007_v23  ;;  %480 = vst.msk [vmem:[#allocation2 + $0xe9] sm:$0x1] %vm452_vm4, %v2007_v23 }
  0x1d   :  { %481 = vst.msk [vmem:[#allocation2 + $0xf9] sm:$0x1] %vm452_vm4, %v2007_v23  ;;  %482 = vst.msk [vmem:[#allocation2 + $0x109] sm:$0x1] %vm452_vm4, %v2007_v23 }
  0x1e   :  { %1877 = vmatmul.mubr.msk.f32.gmra.mrb[8].mxu0 %vm48_vm0, %v36_v16  ;;  %1021 = vrot.lane.b32.xlu1 %v622_v30, %s2010_s19  ;;  %483 = vst.msk [vmem:[#allocation2 + $0x119] sm:$0x1] %vm452_vm4, %v2007_v23  ;;  %484 = vst.msk [vmem:[#allocation2 + $0x129] sm:$0x1] %vm452_vm4, %v2007_v23 }
  0x1f   :  { %1879 = vmatprep.mubr.msk.f32.mxu0 %vm48_vm0, %v37_v17  ;;  %1133 = vrot.lane.b32.xlu0 %v646_v32, %s2012_s21 }
  0x22   :  { %1880 = vmatmul.mubr.msk.f32.gmra.mrb[10].mxu0 %vm48_vm0, %v38_v18  ;;  %1085 = vrot.lane.b32.xlu1 %v638_v31, %s2011_s20 }
  0x23   :  { %1882 = vmatprep.mubr.msk.f32.mxu0 %vm48_vm0, %v39_v19 }
  0x26   :  { %1883 = vmatmul.mubr.msk.f32.gmra.mrb[12].mxu0 %vm48_vm0, %v40_v20 }
  0x27   :  { %1885 = vmatprep.mubr.msk.f32.mxu0 %vm48_vm0, %v41_v21 }
  0x2a   :  { %1886 = vmatmul.mubr.msk.f32.gmra.mrb[14].mxu0 %vm48_vm0, %v42_v22 }
  0xe1   :  { %v1866_v33 = vpop.f32.mrb[0].mxu0 }
  0xe2   :  { %v250_v34 = vsel %vm248_vm2, %v1866_v33, 0.0  ;;  %v167_v35 = vpop.f32.mrb[1].mxu0 }
  0xe3   :  { %v249_v36 = vsel %vm248_vm2, %v167_v35, 0.0 }
  0xe4   :  { %v251_v37 = vadd.f32 %v250_v34, %v249_v36 }
  0xe5   :  { %v1869_v38 = vpop.f32.mrb[2].mxu0 }
  0xe6   :  { %v177_v39 = vpop.f32.mrb[3].mxu0  ;;  %v254_v42 = vsel %vm248_vm2, %v1869_v38, 0.0 }
  0xe7   :  { %v252_v40 = vsel %vm248_vm2, %v177_v39, 0.0 }
  0xe8   :  { %v253_v41 = vadd.f32 %v252_v40, %v251_v37 }
  0xe9   :  { %v1872_v43 = vpop.f32.mrb[4].mxu0 }
  0xea   :  { %v187_v44 = vpop.f32.mrb[5].mxu0  ;;  %v255_v45 = vadd.f32 %v254_v42, %v253_v41  ;;  %v258_v48 = vsel %vm248_vm2, %v1872_v43, 0.0 }
  0xeb   :  { %v256_v46 = vsel %vm248_vm2, %v187_v44, 0.0 }
  0xec   :  { %v257_v47 = vadd.f32 %v256_v46, %v255_v45 }
  0xed   :  { %v1875_v49 = vpop.f32.mrb[6].mxu0 }
  0xee   :  { %v197_v50 = vpop.f32.mrb[7].mxu0  ;;  %v259_v51 = vadd.f32 %v258_v48, %v257_v47  ;;  %v262_v54 = vsel %vm248_vm2, %v1875_v49, 0.0 }
  0xef   :  { %v260_v52 = vsel %vm248_vm2, %v197_v50, 0.0 }
  0xf0   :  { %v261_v53 = vadd.f32 %v260_v52, %v259_v51 }
  0xf1   :  { %v2190_v55 = vpop.f32.mrb[8].mxu0 }
  0xf2   :  { %v263_v56 = vadd.f32 %v262_v54, %v261_v53  ;;  %v271_v57 = vsel %vm248_vm2, %v2190_v55, 0.0  ;;  %v2194_v58 = vpop.f32.mrb[9].mxu0 }
  0xf3   :  { %v270_v59 = vsel %vm248_vm2, %v2194_v58, 0.0 }
  0xf4   :  { %v264_v60 = vrot.slane %v263_v56, 4  ;;  %v272_v61 = vadd.f32 %v271_v57, %v270_v59 }
  0xf5   :  { %v2198_v62 = vpop.f32.mrb[10].mxu0 }
  0xf6   :  { %v265_v63 = vadd.f32 %v264_v60, %v263_v56  ;;  %v2200_v0 = vpop.f32.mrb[11].mxu0  ;;  %v275_v1 = vsel %vm248_vm2, %v2198_v62, 0.0 }
  0xf7   :  { %v273_v2 = vsel %vm248_vm2, %v2200_v0, 0.0 }
  0xf8   :  { %v266_v3 = vrot.slane %v265_v63, 2  ;;  %v274_v4 = vadd.f32 %v273_v2, %v272_v61 }
  0xf9   :  { %v2206_v5 = vpop.f32.mrb[12].mxu0 }
  0xfa   :  { %v267_v6 = vadd.f32 %v266_v3, %v265_v63  ;;  %v227_v7 = vpop.f32.mrb[13].mxu0  ;;  %v276_v8 = vadd.f32 %v275_v1, %v274_v4  ;;  %v279_v9 = vsel %vm248_vm2, %v2206_v5, 0.0 }
  0xfb   :  { %v277_v10 = vsel %vm248_vm2, %v227_v7, 0.0 }
  0xfc   :  { %v268_v11 = vrot.slane %v267_v6, 1  ;;  %v278_v12 = vadd.f32 %v277_v10, %v276_v8 }
  0xfd   :  { %v1887_v13 = vpop.f32.mrb[14].mxu0 }
  0xfe   :  { %v269_v14 = vadd.f32 %v268_v11, %v267_v6  ;;  %v237_v15 = vpop.f32.mrb[15].mxu0  ;;  %v280_v16 = vadd.f32 %v279_v9, %v278_v12  ;;  %v283_v31 = vsel %vm248_vm2, %v1887_v13, 0.0 }
  0xff   :  { %v281_v17 = vsel %vm248_vm2, %v237_v15, 0.0 }
 0x100   :  { %v291_v18 = vmul.f32 0.015625, %v269_v14  ;;  %v282_v19 = vadd.f32 %v281_v17, %v280_v16 }
 0x102   :  { %v2212_v20 = vsub.f32 %v167_v35, %v291_v18  ;;  %v2214_v21 = vsub.f32 %v1866_v33, %v291_v18  ;;  %v2216_v22 = vsub.f32 %v177_v39, %v291_v18  ;;  %v2218_v23 = vsub.f32 %v1869_v38, %v291_v18 }
 0x103   :  { %v2220_v24 = vsub.f32 %v187_v44, %v291_v18  ;;  %v2222_v25 = vsub.f32 %v1872_v43, %v291_v18  ;;  %v2224_v26 = vsub.f32 %v197_v50, %v291_v18  ;;  %v2226_v27 = vsub.f32 %v1875_v49, %v291_v18 }
 0x104   :  { %v309_v28 = vmul.f32 %v2212_v20, %v2212_v20  ;;  %v310_v29 = vmul.f32 %v2214_v21, %v2214_v21  ;;  %v311_v30 = vmul.f32 %v2216_v22, %v2216_v22  ;;  %v312_v32 = vmul.f32 %v2218_v23, %v2218_v23 }
 0x105   :  { %v313_v36 = vmul.f32 %v2220_v24, %v2220_v24  ;;  %v284_v38 = vadd.f32 %v283_v31, %v282_v19  ;;  %v314_v40 = vmul.f32 %v2222_v25, %v2222_v25  ;;  %v315_v44 = vmul.f32 %v2224_v26, %v2224_v26 }
 0x106   :  { %v325_v33 = vsel %vm248_vm2, %v309_v28, 0.0  ;;  %v326_v34 = vsel %vm248_vm2, %v310_v29, 0.0  ;;  %v328_v37 = vsel %vm248_vm2, %v311_v30, 0.0  ;;  %v330_v41 = vsel %vm248_vm2, %v312_v32, 0.0 }
 0x107   :  { %v327_v35 = vadd.f32 %v326_v34, %v325_v33  ;;  %v285_v42 = vrot.slane %v284_v38, 4  ;;  %v332_v45 = vsel %vm248_vm2, %v313_v36, 0.0  ;;  %v316_v48 = vmul.f32 %v2226_v27, %v2226_v27 }
 0x108   :  { %v334_v49 = vsel %vm248_vm2, %v314_v40, 0.0  ;;  %v336_v52 = vsel %vm248_vm2, %v315_v44, 0.0  ;;  %v377_v40 = vlaneseq }
 0x109   :  { %v329_v39 = vadd.f32 %v328_v37, %v327_v35  ;;  %v286_v46 = vadd.f32 %v285_v42, %v284_v38  ;;  %v338_v56 = vsel %vm248_vm2, %v316_v48, 0.0 }
 0x10a   :  { %v378_v44 = vshrl.u32 %v377_v40, 7 }
 0x10b   :  { %v331_v43 = vadd.f32 %v330_v41, %v329_v39  ;;  %v287_v50 = vrot.slane %v286_v46, 2 }
 0x10c   :  { %v2301_v48 = vsub.s32 0, %v378_v44 }
 0x10d   :  { %v333_v47 = vadd.f32 %v332_v45, %v331_v43  ;;  %v288_v53 = vadd.f32 %v287_v50, %v286_v46  ;;  %v246_v46 = vld [vmem:[%s2877_s2] sm:$0x1]  ;;  %s2013_s2 = smov 24  }
 0x10f   :  { %v335_v51 = vadd.f32 %v334_v49, %v333_v47  ;;  %v289_v57 = vrot.slane %v288_v53, 1 }
 0x111   :  { %v337_v54 = vadd.f32 %v336_v52, %v335_v51  ;;  %v290_v60 = vadd.f32 %v289_v57, %v288_v53 }
 0x113   :  { %v339_v59 = vadd.f32 %v338_v56, %v337_v54  ;;  %v292_v63 = vmul.f32 0.015625, %v290_v60  ;;  %v2307_v54 = vld [vmem:[%s2878_s3] ss:$0 sm:$0xff]  ;;  %s2014_s3 = smov 32  }
 0x115   :  { %v340_v61 = vrot.slane %v339_v59, 4  ;;  %v2254_v2 = vsub.f32 %v2194_v58, %v292_v63  ;;  %v2257_v3 = vsub.f32 %v2190_v55, %v292_v63  ;;  %v2260_v4 = vsub.f32 %v2200_v0, %v292_v63 }
 0x116   :  { %v2263_v6 = vsub.f32 %v2198_v62, %v292_v63  ;;  %v2265_v9 = vsub.f32 %v227_v7, %v292_v63  ;;  %v2268_v10 = vsub.f32 %v2206_v5, %v292_v63  ;;  %v2270_v11 = vsub.f32 %v237_v15, %v292_v63 }
 0x117   :  { %v341_v1 = vadd.f32 %v340_v61, %v339_v59  ;;  %v2272_v12 = vsub.f32 %v1887_v13, %v292_v63  ;;  %v317_v55 = vmul.f32 %v2254_v2, %v2254_v2  ;;  %v318_v58 = vmul.f32 %v2257_v3, %v2257_v3 }
 0x118   :  { %v319_v62 = vmul.f32 %v2260_v4, %v2260_v4  ;;  %v320_v7 = vmul.f32 %v2263_v6, %v2263_v6  ;;  %v321_v5 = vmul.f32 %v2265_v9, %v2265_v9  ;;  %v322_v18 = vmul.f32 %v2268_v10, %v2268_v10 }
 0x119   :  { %v342_v8 = vrot.slane %v341_v1, 2  ;;  %v346_v14 = vsel %vm248_vm2, %v317_v55, 0.0  ;;  %v347_v13 = vsel %vm248_vm2, %v318_v58, 0.0  ;;  %v323_v30 = vmul.f32 %v2270_v11, %v2270_v11 }
 0x11a   :  { %v348_v16 = vadd.f32 %v347_v13, %v346_v14  ;;  %v349_v17 = vsel %vm248_vm2, %v319_v62, 0.0  ;;  %v351_v19 = vsel %vm248_vm2, %v320_v7, 0.0  ;;  %v353_v31 = vsel %vm248_vm2, %v321_v5, 0.0 }
 0x11b   :  { %v343_v0 = vadd.f32 %v342_v8, %v341_v1  ;;  %v324_v34 = vmul.f32 %v2272_v12, %v2272_v12  ;;  %v355_v35 = vsel %vm248_vm2, %v322_v18, 0.0  ;;  %v357_v38 = vsel %vm248_vm2, %v323_v30, 0.0 }
 0x11c   :  { %v350_v29 = vadd.f32 %v349_v17, %v348_v16 }
 0x11d   :  { %v344_v15 = vrot.slane %v343_v0, 1  ;;  %v359_v41 = vsel %vm248_vm2, %v324_v34, 0.0 }
 0x11e   :  { %v352_v33 = vadd.f32 %v351_v19, %v350_v29 }
 0x11f   :  { %v345_v28 = vadd.f32 %v344_v15, %v343_v0 }
 0x120   :  { %v354_v37 = vadd.f32 %v353_v31, %v352_v33 }
 0x121   :  { %v367_v32 = vmul.f32 0.015625, %v345_v28 }
 0x122   :  { %v356_v39 = vadd.f32 %v355_v35, %v354_v37 }
 0x123   :  { %v369_v36 = vadd.f32 1e-05, %v367_v32 }
 0x124   :  { %v358_v42 = vadd.f32 %v357_v38, %v356_v39 }
 0x125   :  { %1975 = vrsqrt.f32 %v369_v36 }
 0x126   :  { %v360_v43 = vadd.f32 %v359_v41, %v358_v42 }
 0x128   :  { %v361_v45 = vrot.slane %v360_v43, 4 }
 0x12a   :  { %v362_v47 = vadd.f32 %v361_v45, %v360_v43 }
 0x12c   :  { %v363_v50 = vrot.slane %v362_v47, 2 }
 0x12e   :  { %v364_v52 = vadd.f32 %v363_v50, %v362_v47  ;;  %v501_v50 = vld [vmem:[%s2879_s4] sm:$0xff] }
 0x12f   :  { %v1976_v49 = vpop.eup %1975 }
 0x130   :  { %v373_v51 = vmul.f32 %v1976_v49, %v246_v46  ;;  %v365_v56 = vrot.slane %v364_v52, 1 }
 0x132   :  { %v380_v53 = vrot.slane %v373_v51, %v2301_v48  ;;  %v366_v16 = vadd.f32 %v365_v56, %v364_v52  ;;  %v502_v51 = vld [vmem:[%s2879_s4 + $0x8] sm:$0xff] }
 0x134   :  { %v387_v57 = vmul.f32 %v380_v53, %v2212_v20  ;;  %v388_v59 = vmul.f32 %v380_v53, %v2214_v21  ;;  %v389_v60 = vmul.f32 %v380_v53, %v2216_v22  ;;  %v390_v61 = vmul.f32 %v380_v53, %v2218_v23 }
 0x135   :  { %v391_v63 = vmul.f32 %v380_v53, %v2220_v24  ;;  %v392_v1 = vmul.f32 %v380_v53, %v2222_v25  ;;  %v393_v8 = vmul.f32 %v380_v53, %v2224_v26  ;;  %v394_v55 = vmul.f32 %v380_v53, %v2226_v27 }
 0x136   :  { %v409_v58 = vadd.f32 %v2307_v54, %v387_v57  ;;  %v410_v62 = vadd.f32 %v2307_v54, %v388_v59  ;;  %v411_v20 = vadd.f32 %v2307_v54, %v389_v60  ;;  %v412_v21 = vadd.f32 %v2307_v54, %v390_v61  ;;  %v503_v61 = vld [vmem:[%s2879_s4 + $0x10] sm:$0xff] }
 0x137   :  { %v413_v22 = vadd.f32 %v2307_v54, %v391_v63  ;;  %v414_v23 = vadd.f32 %v2307_v54, %v392_v1  ;;  %v415_v24 = vadd.f32 %v2307_v54, %v393_v8  ;;  %v416_v25 = vadd.f32 %v2307_v54, %v394_v55  ;;  %v504_v63 = vld [vmem:[%s2879_s4 + $0x18] sm:$0xff]  ;;  %v505_v8 = vld [vmem:[%s2879_s4 + $0x20] sm:$0xff]  ;;  %v506_v55 = vld [vmem:[%s2879_s4 + $0x28] sm:$0xff] }
 0x138   :  { %v425_v0 = vmax.f32 %v409_v58, 0.0  ;;  %v426_v26 = vmax.f32 %v410_v62, 0.0  ;;  %v427_v7 = vmax.f32 %v411_v20, 0.0  ;;  %v428_v27 = vmax.f32 %v412_v21, 0.0  ;;  %v507_v21 = vld [vmem:[%s2879_s4 + $0x30] sm:$0xff] }
 0x139   :  { %v429_v5 = vmax.f32 %v413_v22, 0.0  ;;  %v430_v14 = vmax.f32 %v414_v23, 0.0  ;;  %v431_v13 = vmax.f32 %v415_v24, 0.0  ;;  %v432_v15 = vmax.f32 %v416_v25, 0.0  ;;  %v508_v22 = vld [vmem:[%s2879_s4 + $0x38] sm:$0xff]  ;;  %v509_v24 = vld [vmem:[%s2879_s4 + $0x40] sm:$0xff] }
 0x13a   :  { %485 = vst.msk [vmem:[#allocation2 + $0x11] sm:$0xff] %vm248_vm2, %v425_v0  ;;  %486 = vst.msk [vmem:[#allocation2 + $0x21] sm:$0xff] %vm248_vm2, %v426_v26  ;;  %v368_v17 = vmul.f32 0.015625, %v366_v16  ;;  %v1938_v59 = vpack.c.bf16 %v502_v51, %v501_v50  ;;  %v1942_v1 = vpack.c.bf16 %v504_v63, %v503_v61  ;;  %v1946_v58 = vpack.c.bf16 %v506_v55, %v505_v8  ;;  %v2466_v16 = vpop.permute.xlu1 %751 }
 0x13b   :  { %487 = vst.msk [vmem:[#allocation2 + $0x31] sm:$0xff] %vm248_vm2, %v427_v7  ;;  %488 = vst.msk [vmem:[#allocation2 + $0x41] sm:$0xff] %vm248_vm2, %v428_v27  ;;  %v1950_v23 = vpack.c.bf16 %v508_v22, %v507_v21 }
 0x13c   :  { %489 = vst.msk [vmem:[#allocation2 + $0x51] sm:$0xff] %vm248_vm2, %v429_v5  ;;  %490 = vst.msk [vmem:[#allocation2 + $0x61] sm:$0xff] %vm248_vm2, %v430_v14  ;;  %v370_v18 = vadd.f32 1e-05, %v368_v17  ;;  %1954 = vmatprep.subr.bf16.mxu1 %v1938_v59  ;;  %1939 = vmatprep.subr.bf16.mxu0 %v1938_v59 }
 0x13d   :  { %491 = vst.msk [vmem:[#allocation2 + $0x71] sm:$0xff] %vm248_vm2, %v431_v13  ;;  %492 = vst.msk [vmem:[#allocation2 + $0x81] sm:$0xff] %vm248_vm2, %v432_v15  ;;  %1959 = vmatpush3.bf16.msra.mxu1 %v1938_v59  ;;  %1941 = vmatpush3.bf16.msra.mxu0 %v1938_v59 }
 0x13e   :  { %1977 = vrsqrt.f32 %v370_v18  ;;  %1955 = vmatprep.subr.bf16.mxu1 %v1942_v1  ;;  %1943 = vmatprep.subr.bf16.mxu0 %v1942_v1  ;;  %v2471_v18 = vpop.permute.xlu1 %1005 }
 0x141   :  { %v2333_v19 = vld [vmem:[#allocation2 + $0x22] sm:$0xff]  ;;  %1960 = vmatpush3.bf16.msra.mxu1 %v1942_v1  ;;  %1945 = vmatpush3.bf16.msra.mxu0 %v1942_v1  ;;  %v527_v17 = vld [vmem:[#allocation2 + $0x11] sm:$0xff] }
 0x142   :  { %v2335_v28 = vld [vmem:[#allocation2 + $0x21] sm:$0xff]  ;;  %739 = vrot.lane.b32.xlu1 %v2333_v19, %s2008_s1  ;;  %v2341_v29 = vld [vmem:[#allocation2 + $0x32] sm:$0xff]  ;;  %1956 = vmatprep.subr.bf16.mxu1 %v1946_v58 }
 0x143   :  { %675 = vrot.lane.b32.xlu0 %v2335_v28, %s2009_s0  ;;  %v2343_v30 = vld [vmem:[#allocation2 + $0x31] sm:$0xff]  ;;  %v2349_v31 = vld [vmem:[#allocation2 + $0x40] sm:$0xff]  ;;  %1947 = vmatprep.subr.bf16.mxu0 %v1946_v58 }
 0x144   :  { %v2351_v32 = vld [vmem:[#allocation2 + $0x30] sm:$0xff]  ;;  %v2358_v36 = vld [vmem:[#allocation2 + $0x41] sm:$0xff] }
 0x145   :  { %v546_v57 = vld [vmem:[#allocation2 + $0x42] sm:$0xff]  ;;  %v531_v60 = vld [vmem:[#allocation2 + $0x51] sm:$0xff]  ;;  %1961 = vmatpush3.bf16.msra.mxu1 %v1946_v58  ;;  %1949 = vmatpush3.bf16.msra.mxu0 %v1946_v58 }
 0x146   :  { %741 = vrot.lane.b32.xlu1 %v2341_v29, %s2008_s1  ;;  %v2415_v62 = vld [vmem:[#allocation2 + $0x50] sm:$0xff]  ;;  %1957 = vmatprep.subr.bf16.mxu1 %v1950_v23  ;;  %v2434_v25 = vld [vmem:[#allocation2 + $0x60] sm:$0xff] }
 0x147   :  { %677 = vrot.lane.b32.xlu0 %v2343_v30, %s2009_s0  ;;  %v547_v20 = vld [vmem:[#allocation2 + $0x52] sm:$0xff]  ;;  %1951 = vmatprep.subr.bf16.mxu0 %v1950_v23  ;;  %v579_v0 = vld [vmem:[#allocation2 + $0x61] sm:$0xff] }
 0x148   :  { %v1978_v33 = vpop.eup %1977  ;;  %v548_v26 = vld [vmem:[#allocation2 + $0x62] sm:$0xff]  ;;  %v533_v7 = vld [vmem:[#allocation2 + $0x71] sm:$0xff] }
 0x149   :  { %v374_v34 = vmul.f32 %v1978_v33, %v246_v46  ;;  %1962 = vmatpush3.bf16.msra.mxu1 %v1950_v23  ;;  %1953 = vmatpush3.bf16.msra.mxu0 %v1950_v23  ;;  %v2449_v27 = vld [vmem:[#allocation2 + $0x70] sm:$0xff]  ;;  %v565_v14 = vld [vmem:[#allocation2 + $0x80] sm:$0xff] }
 0x14a   :  { %805 = vrot.lane.b32.xlu1 %v2349_v31, %s2013_s2  ;;  %1958 = vmatprep.subr.mxu1 %v509_v24  ;;  %v549_v5 = vld [vmem:[#allocation2 + $0x72] sm:$0xff]  ;;  %v581_v13 = vld [vmem:[#allocation2 + $0x81] sm:$0xff] }
 0x14b   :  { %803 = vrot.lane.b32.xlu0 %v2351_v32, %s2013_s2  ;;  %v384_v35 = vrot.slane %v374_v34, %v2301_v48  ;;  %1904 = vmatprep.subr.mxu0 %v509_v24  ;;  %v597_v15 = vld [vmem:[#allocation2 + $0x82] sm:$0xff]  ;;  %v2473_v33 = vld [vmem:[#allocation2 + $0x10] sm:$0xff] }
 0x14c   :  { %v543_v34 = vld [vmem:[#allocation2 + $0x12] sm:$0xff] }
 0x14d   :  { %v395_v37 = vmul.f32 %v384_v35, %v2254_v2  ;;  %v396_v38 = vmul.f32 %v384_v35, %v2257_v3  ;;  %v397_v39 = vmul.f32 %v384_v35, %v2260_v4  ;;  %v398_v40 = vmul.f32 %v384_v35, %v2263_v6  ;;  %1963 = vmatpush3.msra.mxu1 %v509_v24 }
 0x14e   :  { %679 = vrot.lane.b32.xlu1 %v2358_v36, %s2009_s0  ;;  %v399_v41 = vmul.f32 %v384_v35, %v2265_v9  ;;  %v400_v42 = vmul.f32 %v384_v35, %v2268_v10  ;;  %v401_v43 = vmul.f32 %v384_v35, %v2270_v11  ;;  %v402_v44 = vmul.f32 %v384_v35, %v2272_v12  ;;  %v2477_v35 = vpop.permute.xlu0 %687 }
 0x14f   :  { %867 = vrot.lane.b32.xlu0 %v2343_v30, %s2014_s3  ;;  %v417_v45 = vadd.f32 %v2307_v54, %v395_v37  ;;  %v418_v46 = vadd.f32 %v2307_v54, %v396_v38  ;;  %v419_v2 = vadd.f32 %v2307_v54, %v397_v39  ;;  %v420_v3 = vadd.f32 %v2307_v54, %v398_v40  ;;  %v2481_v37 = vpop.permute.xlu1 %1069 }
 0x150   :  { %v421_v4 = vadd.f32 %v2307_v54, %v399_v41  ;;  %v422_v6 = vadd.f32 %v2307_v54, %v400_v42  ;;  %v423_v9 = vadd.f32 %v2307_v54, %v401_v43  ;;  %v424_v10 = vadd.f32 %v2307_v54, %v402_v44  ;;  %1905 = vmatpush3.msra.mxu0 %v509_v24 }
 0x151   :  { %v433_v11 = vmax.f32 %v417_v45, 0.0  ;;  %v434_v12 = vmax.f32 %v418_v46, 0.0  ;;  %v435_v47 = vmax.f32 %v419_v2, 0.0  ;;  %v436_v49 = vmax.f32 %v420_v3, 0.0 }
 0x152   :  { %931 = vrot.lane.b32.xlu1 %v2341_v29, %s2015_s26  ;;  %v437_v52 = vmax.f32 %v421_v4, 0.0  ;;  %v438_v53 = vmax.f32 %v422_v6, 0.0  ;;  %v439_v54 = vmax.f32 %v423_v9, 0.0  ;;  %v440_v56 = vmax.f32 %v424_v10, 0.0  ;;  %v2484_v38 = vpop.permute.xlu0 %671 }
 0x153   :  { %869 = vrot.lane.b32.xlu0 %v2358_v36, %s2014_s3  ;;  %493 = vst.msk [vmem:[#allocation2 + $0xb1] sm:$0xff] %vm248_vm2, %v433_v11  ;;  %494 = vst.msk [vmem:[#allocation2 + $0xc1] sm:$0xff] %vm248_vm2, %v434_v12  ;;  %v2489_v39 = vpop.permute.xlu1 %1021 }
 0x154   :  { %495 = vst.msk [vmem:[#allocation2 + $0xd1] sm:$0xff] %vm248_vm2, %v435_v47  ;;  %496 = vst.msk [vmem:[#allocation2 + $0xe1] sm:$0xff] %vm248_vm2, %v436_v49 }
 0x155   :  { %497 = vst.msk [vmem:[#allocation2 + $0xf1] sm:$0xff] %vm248_vm2, %v437_v52  ;;  %498 = vst.msk [vmem:[#allocation2 + $0x101] sm:$0xff] %vm248_vm2, %v438_v53 }
 0x156   :  { %499 = vst.msk [vmem:[#allocation2 + $0x111] sm:$0xff] %vm248_vm2, %v439_v54  ;;  %500 = vst.msk [vmem:[#allocation2 + $0x121] sm:$0xff] %vm248_vm2, %v440_v56  ;;  %743 = vrot.lane.b32.xlu1 %v546_v57, %s2008_s1  ;;  %v2491_v40 = vpop.permute.xlu0 %735 }
 0x157   :  { %681 = vrot.lane.b32.xlu0 %v531_v60, %s2009_s0  ;;  %v2498_v41 = vpop.permute.xlu1 %1085 }
 0x15a   :  { %995 = vrot.lane.b32.xlu1 %v2349_v31, %s2010_s19  ;;  %v2500_v42 = vpop.permute.xlu0 %1133  ;;  %v535_v45 = vld [vmem:[#allocation2 + $0xb1] sm:$0xff]  ;;  %v2520_v4 = vld [vmem:[#allocation2 + $0xc0] sm:$0xff] }
 0x15b   :  { %933 = vrot.lane.b32.xlu0 %v546_v57, %s2015_s26  ;;  %v551_v2 = vld [vmem:[#allocation2 + $0xb2] sm:$0xff]  ;;  %v536_v9 = vld [vmem:[#allocation2 + $0xc1] sm:$0xff] }
 0x15c   :  { %v2514_v3 = vld [vmem:[#allocation2 + $0xb0] sm:$0xff]  ;;  %v552_v12 = vld [vmem:[#allocation2 + $0xc2] sm:$0xff] }
 0x15d   :  { %v537_v50 = vld [vmem:[#allocation2 + $0xd1] sm:$0xff] }
 0x15e   :  { %807 = vrot.lane.b32.xlu1 %v2415_v62, %s2013_s2  ;;  %v2539_v53 = vld [vmem:[#allocation2 + $0xd0] sm:$0xff] }
 0x15f   :  { %745 = vrot.lane.b32.xlu0 %v547_v20, %s2008_s1 }
 0x162   :  { %1059 = vrot.lane.b32.xlu1 %v2358_v36, %s2011_s20  ;;  %v559_v36 = vld [vmem:[#allocation2 + $0x20] sm:$0xff] }
 0x163   :  { %997 = vrot.lane.b32.xlu0 %v2415_v62, %s2010_s19 }
 0x166   :  { %871 = vrot.lane.b32.xlu1 %v531_v60, %s2014_s3 }
 0x167   :  { %809 = vrot.lane.b32.xlu0 %v2434_v25, %s2013_s2 }
 0x16a   :  { %1123 = vrot.lane.b32.xlu1 %v546_v57, %s2012_s21  ;;  %v553_v57 = vld [vmem:[#allocation2 + $0xd2] sm:$0xff] }
 0x16b   :  { %1061 = vrot.lane.b32.xlu0 %v531_v60, %s2011_s20 }
 0x16e   :  { %873 = vrot.lane.b32.xlu1 %v579_v0, %s2014_s3 }
 0x16f   :  { %683 = vrot.lane.b32.xlu0 %v579_v0, %s2009_s0 }
 0x172   :  { %1125 = vrot.lane.b32.xlu1 %v547_v20, %s2012_s21 }
 0x173   :  { %935 = vrot.lane.b32.xlu0 %v547_v20, %s2015_s26  ;;  %v2558_v20 = vld [vmem:[#allocation2 + $0xe0] sm:$0xff] }
 0x176   :  { %747 = vrot.lane.b32.xlu1 %v548_v26, %s2008_s1 }
 0x177   :  { %685 = vrot.lane.b32.xlu0 %v533_v7, %s2009_s0 }
 0x17a   :  { %999 = vrot.lane.b32.xlu1 %v2434_v25, %s2010_s19 }
 0x17b   :  { %937 = vrot.lane.b32.xlu0 %v548_v26, %s2015_s26 }
 0x17e   :  { %811 = vrot.lane.b32.xlu1 %v2449_v27, %s2013_s2 }
 0x17f   :  { %749 = vrot.lane.b32.xlu0 %v549_v5, %s2008_s1 }
 0x182   :  { %1063 = vrot.lane.b32.xlu1 %v579_v0, %s2011_s20 }
 0x183   :  { %1001 = vrot.lane.b32.xlu0 %v2449_v27, %s2010_s19 }
 0x186   :  { %875 = vrot.lane.b32.xlu1 %v533_v7, %s2014_s3 }
 0x187   :  { %813 = vrot.lane.b32.xlu0 %v565_v14, %s2013_s2 }
 0x18a   :  { %1127 = vrot.lane.b32.xlu1 %v548_v26, %s2012_s21 }
 0x18b   :  { %1065 = vrot.lane.b32.xlu0 %v533_v7, %s2011_s20 }
 0x18e   :  { %877 = vrot.lane.b32.xlu1 %v581_v13, %s2014_s3 }
 0x18f   :  { %939 = vrot.lane.b32.xlu0 %v549_v5, %s2015_s26 }
 0x192   :  { %1129 = vrot.lane.b32.xlu1 %v549_v5, %s2012_s21  ;;  %v585_v5 = vld [vmem:[#allocation2 + $0xe1] sm:$0xff] }
 0x193   :  { %941 = vrot.lane.b32.xlu0 %v597_v15, %s2015_s26 }
 0x196   :  { %1003 = vrot.lane.b32.xlu1 %v565_v14, %s2010_s19 }
 0x197   :  { %1067 = vrot.lane.b32.xlu0 %v581_v13, %s2011_s20 }
 0x19a   :  { %673 = vrot.lane.b32.xlu1 %v527_v17, %s2009_s0 }
 0x19b   :  { %1131 = vrot.lane.b32.xlu0 %v597_v15, %s2012_s21 }
 0x19e   :  { %799 = vrot.lane.b32.xlu1 %v2473_v33, %s2013_s2 }
 0x19f   :  { %737 = vrot.lane.b32.xlu0 %v543_v34, %s2008_s1 }
 0x1a2   :  { %801 = vrot.lane.b32.xlu1 %v559_v36, %s2013_s2 }
 0x1a3   :  { %863 = vrot.lane.b32.xlu0 %v527_v17, %s2014_s3 }
 0x1a6   :  { %865 = vrot.lane.b32.xlu1 %v2335_v28, %s2014_s3 }
 0x1a7   :  { %927 = vrot.lane.b32.xlu0 %v543_v34, %s2015_s26 }
 0x1aa   :  { %929 = vrot.lane.b32.xlu1 %v2333_v19, %s2015_s26 }
 0x1ab   :  { %991 = vrot.lane.b32.xlu0 %v559_v36, %s2010_s19 }
 0x1ae   :  { %1055 = vrot.lane.b32.xlu1 %v2335_v28, %s2011_s20 }
 0x1af   :  { %993 = vrot.lane.b32.xlu0 %v2351_v32, %s2010_s19 }
 0x1b2   :  { %1057 = vrot.lane.b32.xlu1 %v2343_v30, %s2011_s20 }
 0x1b3   :  { %1119 = vrot.lane.b32.xlu0 %v2333_v19, %s2012_s21 }
 0x1b4   :  { %v740_v43 = vpop.permute.xlu1 %739 }
 0x1b5   :  { %v676_v44 = vpop.permute.xlu0 %675 }
 0x1b6   :  { %1121 = vrot.lane.b32.xlu1 %v2341_v29, %s2012_s21  ;;  %v1169_v59 = vsel %vm248_vm2, %v559_v36, %v676_v44 }
 0x1b7   :  { %689 = vrot.lane.b32.xlu0 %v535_v45, %s2009_s0  ;;  %v1186_v63 = vsel %vm1183_vm6, %v1169_v59, %v740_v43  ;;  %v2603_v59 = vld [vmem:[#allocation2 + $0x100] sm:$0xff] }
 0x1b8   :  { %v2511_v28 = vpop.permute.xlu1 %741 }
 0x1b9   :  { %v678_v46 = vpop.permute.xlu0 %677 }
 0x1ba   :  { %753 = vrot.lane.b32.xlu1 %v551_v2, %s2008_s1  ;;  %v1170_v23 = vsel %vm248_vm2, %v2351_v32, %v678_v46  ;;  %v554_v46 = vld [vmem:[#allocation2 + $0xe2] sm:$0xff] }
 0x1bb   :  { %815 = vrot.lane.b32.xlu0 %v2514_v3, %s2013_s2  ;;  %v1187_v14 = vsel %vm1183_vm6, %v1170_v23, %v2511_v28 }
 0x1bc   :  { %v2518_v19 = vpop.permute.xlu1 %805 }
 0x1bd   :  { %v804_v30 = vpop.permute.xlu0 %803  ;;  %v1204_v13 = vsel %vm1200_vm5, %v1187_v14, %v2518_v19 }
 0x1be   :  { %817 = vrot.lane.b32.xlu1 %v2520_v4, %s2013_s2  ;;  %v1203_v1 = vsel %vm1200_vm5, %v1186_v63, %v804_v30  ;;  %v539_v30 = vld [vmem:[#allocation2 + $0xf1] sm:$0xff] }
 0x1bf   :  { %879 = vrot.lane.b32.xlu0 %v535_v45, %s2014_s3 }
 0x1c0   :  { %v2525_v29 = vpop.permute.xlu1 %679 }
 0x1c1   :  { %v868_v6 = vpop.permute.xlu0 %867 }
 0x1c2   :  { %691 = vrot.lane.b32.xlu1 %v536_v9, %s2009_s0  ;;  %v1220_v55 = vsel %vm1217_vm7, %v1203_v1, %v868_v6 }
 0x1c3   :  { %881 = vrot.lane.b32.xlu0 %v536_v9, %s2014_s3 }
 0x1c4   :  { %v932_v10 = vpop.permute.xlu1 %931 }
 0x1c5   :  { %v870_v11 = vpop.permute.xlu0 %869  ;;  %v1237_v21 = vsel %vm1234_vm8, %v1220_v55, %v932_v10  ;;  %v2592_v10 = vld [vmem:[#allocation2 + $0xf0] sm:$0xff] }
 0x1c6   :  { %943 = vrot.lane.b32.xlu1 %v551_v2, %s2015_s26  ;;  %v1221_v15 = vsel %vm1217_vm7, %v1204_v13, %v870_v11 }
 0x1c7   :  { %755 = vrot.lane.b32.xlu0 %v552_v12, %s2008_s1 }
 0x1c8   :  { %v2531_v47 = vpop.permute.xlu1 %743 }
 0x1c9   :  { %v2533_v49 = vpop.permute.xlu0 %681 }
 0x1ca   :  { %693 = vrot.lane.b32.xlu1 %v537_v50, %s2009_s0 }
 0x1cb   :  { %1007 = vrot.lane.b32.xlu0 %v2520_v4, %s2010_s19 }
 0x1cc   :  { %v996_v51 = vpop.permute.xlu1 %995 }
 0x1cd   :  { %v934_v52 = vpop.permute.xlu0 %933  ;;  %v1254_v22 = vsel %vm1251_vm9, %v1237_v21, %v996_v51 }
 0x1ce   :  { %945 = vrot.lane.b32.xlu1 %v552_v12, %s2015_s26  ;;  %v1238_v34 = vsel %vm1234_vm8, %v1221_v15, %v934_v52 }
 0x1cf   :  { %819 = vrot.lane.b32.xlu0 %v2539_v53, %s2013_s2 }
 0x1d0   :  { %v2543_v54 = vpop.permute.xlu1 %807 }
 0x1d1   :  { %v2545_v56 = vpop.permute.xlu0 %745 }
 0x1d2   :  { %757 = vrot.lane.b32.xlu1 %v553_v57, %s2008_s1 }
 0x1d3   :  { %1071 = vrot.lane.b32.xlu0 %v536_v9, %s2011_s20 }
 0x1d4   :  { %v1060_v60 = vpop.permute.xlu1 %1059 }
 0x1d5   :  { %v998_v61 = vpop.permute.xlu0 %997  ;;  %v1271_v24 = vsel %vm1268_vm10, %v1254_v22, %v1060_v60 }
 0x1d6   :  { %1009 = vrot.lane.b32.xlu1 %v2539_v53, %s2010_s19  ;;  %v1255_v36 = vsel %vm1251_vm9, %v1238_v34, %v998_v61 }
 0x1d7   :  { %883 = vrot.lane.b32.xlu0 %v537_v50, %s2014_s3 }
 0x1d8   :  { %v872_v8 = vpop.permute.xlu1 %871 }
 0x1d9   :  { %v2556_v58 = vpop.permute.xlu0 %809 }
 0x1da   :  { %821 = vrot.lane.b32.xlu1 %v2558_v20, %s2013_s2 }
 0x1db   :  { %1135 = vrot.lane.b32.xlu0 %v552_v12, %s2012_s21 }
 0x1dc   :  { %v1124_v0 = vpop.permute.xlu1 %1123 }
 0x1dd   :  { %v1062_v26 = vpop.permute.xlu0 %1061  ;;  %v1288_v7 = vsel %vm1285_vm11, %v1271_v24, %v1124_v0 }
 0x1de   :  { %1909 = vmatprep.mubr.msk.f32.mxu1 %vm1302_vm12, %v1288_v7  ;;  %1073 = vrot.lane.b32.xlu1 %v537_v50, %s2011_s20  ;;  %v1272_v43 = vsel %vm1268_vm10, %v1255_v36, %v1062_v26  ;;  %v555_v50 = vld [vmem:[#allocation2 + $0xf2] sm:$0xff] }
 0x1df   :  { %885 = vrot.lane.b32.xlu0 %v585_v5, %s2014_s3 }
 0x1e0   :  { %v874_v32 = vpop.permute.xlu1 %873 }
 0x1e1   :  { %v2577_v17 = vpop.permute.xlu0 %683 }
 0x1e2   :  { %695 = vrot.lane.b32.xlu1 %v585_v5, %s2009_s0 }
 0x1e3   :  { %1137 = vrot.lane.b32.xlu0 %v553_v57, %s2012_s21 }
 0x1e4   :  { %v1126_v44 = vpop.permute.xlu1 %1125 }
 0x1e5   :  { %v1289_v45 = vsel %vm1285_vm11, %v1272_v43, %v1126_v44  ;;  %v936_v28 = vpop.permute.xlu0 %935 }
 0x1e6   :  { %1910 = vmatmul.mubr.msk.f32.vlgmr.msra.gmra.mrb[0].mxu1 %vm1302_vm12, %v1289_v45  ;;  %947 = vrot.lane.b32.xlu1 %v553_v57, %s2015_s26  ;;  %v1171_v57 = vsel %vm248_vm2, %v2349_v31, %v2525_v29  ;;  %v541_v45 = vld [vmem:[#allocation2 + $0x111] sm:$0xff] }
 0x1e7   :  { %759 = vrot.lane.b32.xlu0 %v554_v46, %s2008_s1  ;;  %v1188_v60 = vsel %vm1183_vm6, %v1171_v57, %v2531_v47 }
 0x1e8   :  { %v748_v2 = vpop.permute.xlu1 %747  ;;  %v1205_v61 = vsel %vm1200_vm5, %v1188_v60, %v2543_v54  ;;  %v1172_v54 = vsel %vm248_vm2, %v2415_v62, %v2533_v49  ;;  %v2667_v60 = vld [vmem:[#allocation2 + $0x110] sm:$0xff] }
 0x1e9   :  { %v686_v19 = vpop.permute.xlu0 %685  ;;  %v1222_v1 = vsel %vm1217_vm7, %v1205_v61, %v872_v8  ;;  %v540_v8 = vld [vmem:[#allocation2 + $0x101] sm:$0xff]  ;;  %v1189_v24 = vsel %vm1183_vm6, %v1172_v54, %v2545_v56 }
 0x1ea   :  { %697 = vrot.lane.b32.xlu1 %v539_v30, %s2009_s0  ;;  %v1239_v31 = vsel %vm1234_vm8, %v1222_v1, %v936_v28  ;;  %v1206_v0 = vsel %vm1200_vm5, %v1189_v24, %v2556_v58  ;;  %v1174_v62 = vsel %vm248_vm2, %v2449_v27, %v686_v19  ;;  %v573_v1 = vld [vmem:[#allocation2 + $0x120] sm:$0xff] }
 0x1eb   :  { %1011 = vrot.lane.b32.xlu0 %v2558_v20, %s2010_s19  ;;  %v1223_v7 = vsel %vm1217_vm7, %v1206_v0, %v874_v32  ;;  %v1173_v32 = vsel %vm248_vm2, %v2434_v25, %v2577_v17 }
 0x1ec   :  { %v1000_v6 = vpop.permute.xlu1 %999  ;;  %v1190_v43 = vsel %vm1183_vm6, %v1173_v32, %v748_v2  ;;  %v654_v32 = vld [vmem:[#allocation2 + $0x132] sm:$0xff] }
 0x1ed   :  { %v938_v9 = vpop.permute.xlu0 %937  ;;  %v1256_v29 = vsel %vm1251_vm9, %v1239_v31, %v1000_v6  ;;  %v510_v31 = vld [vmem:[#allocation2] sm:$0xff] }
 0x1ee   :  { %949 = vrot.lane.b32.xlu1 %v554_v46, %s2015_s26  ;;  %v1240_v49 = vsel %vm1234_vm8, %v1223_v7, %v938_v9 }
 0x1ef   :  { %823 = vrot.lane.b32.xlu0 %v2592_v10, %s2013_s2 }
 0x1f0   :  { %v812_v11 = vpop.permute.xlu1 %811 }
 0x1f1   :  { %v750_v12 = vpop.permute.xlu0 %749  ;;  %v1207_v28 = vsel %vm1200_vm5, %v1190_v43, %v812_v11 }
 0x1f2   :  { %761 = vrot.lane.b32.xlu1 %v555_v50, %s2008_s1  ;;  %v1191_v14 = vsel %vm1183_vm6, %v1174_v62, %v750_v12 }
 0x1f3   :  { %1075 = vrot.lane.b32.xlu0 %v585_v5, %s2011_s20 }
 0x1f4   :  { %v1064_v51 = vpop.permute.xlu1 %1063 }
 0x1f5   :  { %v1002_v52 = vpop.permute.xlu0 %1001  ;;  %v1273_v47 = vsel %vm1268_vm10, %v1256_v29, %v1064_v51 }
 0x1f6   :  { %1013 = vrot.lane.b32.xlu1 %v2592_v10, %s2010_s19  ;;  %v1257_v56 = vsel %vm1251_vm9, %v1240_v49, %v1002_v52 }
 0x1f7   :  { %825 = vrot.lane.b32.xlu0 %v2603_v59, %s2013_s2 }
 0x1f8   :  { %v876_v63 = vpop.permute.xlu1 %875 }
 0x1f9   :  { %v814_v55 = vpop.permute.xlu0 %813  ;;  %v1224_v25 = vsel %vm1217_vm7, %v1207_v28, %v876_v63 }
 0x1fa   :  { %887 = vrot.lane.b32.xlu1 %v539_v30, %s2014_s3  ;;  %v1208_v13 = vsel %vm1200_vm5, %v1191_v14, %v814_v55 }
 0x1fb   :  { %1077 = vrot.lane.b32.xlu0 %v539_v30, %s2011_s20  ;;  %v556_v30 = vld [vmem:[#allocation2 + $0x102] sm:$0xff] }
 0x1fc   :  { %v1128_v21 = vpop.permute.xlu1 %1127 }
 0x1fd   :  { %v1290_v22 = vsel %vm1285_vm11, %v1273_v47, %v1128_v21  ;;  %v1066_v23 = vpop.permute.xlu0 %1065  ;;  %v1167_v47 = vsel %vm248_vm2, %v510_v31, %v2484_v38 }
 0x1fe   :  { %1912 = vmatprep.mubr.msk.f32.mxu1 %vm1302_vm12, %v1290_v22  ;;  %1139 = vrot.lane.b32.xlu1 %v554_v46, %s2012_s21  ;;  %v1274_v58 = vsel %vm1268_vm10, %v1257_v56, %v1066_v23  ;;  %v589_v22 = vld [vmem:[#allocation2 + $0x121] sm:$0xff]  ;;  %v1184_v23 = vsel %vm1183_vm6, %v1167_v47, %v2491_v40 }
 0x1ff   :  { %699 = vrot.lane.b32.xlu0 %v540_v8, %s2009_s0  ;;  %v605_v56 = vld [vmem:[#allocation2 + $0x122] sm:$0xff] }
 0x200   :  { %v878_v26 = vpop.permute.xlu1 %877 }
 0x201   :  { %v940_v5 = vpop.permute.xlu0 %939  ;;  %v1225_v27 = vsel %vm1217_vm7, %v1208_v13, %v878_v26 }
 0x202   :  { %889 = vrot.lane.b32.xlu1 %v540_v8, %s2014_s3  ;;  %v1241_v46 = vsel %vm1234_vm8, %v1224_v25, %v940_v5 }
 0x203   :  { %951 = vrot.lane.b32.xlu0 %v555_v50, %s2015_s26 }
 0x204   :  { %v1130_v15 = vpop.permute.xlu1 %1129 }
 0x205   :  { %v1291_v34 = vsel %vm1285_vm11, %v1274_v58, %v1130_v15  ;;  %v942_v36 = vpop.permute.xlu0 %941 }
 0x206   :  { %v1242_v44 = vsel %vm1234_vm8, %v1225_v27, %v942_v36  ;;  %1913 = vmatmul.mubr.msk.f32.gmra.mrb[2].mxu1 %vm1302_vm12, %v1291_v34  ;;  %1141 = vrot.lane.b32.xlu1 %v555_v50, %s2012_s21 }
 0x207   :  { %701 = vrot.lane.b32.xlu0 %v541_v45, %s2009_s0  ;;  %v1259_v19 = vsel %vm1251_vm9, %v1242_v44, %v2471_v18  ;;  %v557_v18 = vld [vmem:[#allocation2 + $0x112] sm:$0xff] }
 0x208   :  { %v1004_v17 = vpop.permute.xlu1 %1003  ;;  %v1276_v11 = vsel %vm1268_vm10, %v1259_v19, %v2481_v37 }
 0x209   :  { %v1068_v2 = vpop.permute.xlu0 %1067  ;;  %v1258_v6 = vsel %vm1251_vm9, %v1241_v46, %v1004_v17  ;;  %v1293_v52 = vsel %vm1285_vm11, %v1276_v11, %v2500_v42 }
 0x20a   :  { %763 = vrot.lane.b32.xlu1 %v556_v30, %s2008_s1  ;;  %v1275_v12 = vsel %vm1268_vm10, %v1258_v6, %v1068_v2 }
 0x20b   :  { %953 = vrot.lane.b32.xlu0 %v556_v30, %s2015_s26 }
 0x20c   :  { %v674_v9 = vpop.permute.xlu1 %673 }
 0x20d   :  { %v1132_v50 = vpop.permute.xlu0 %1131  ;;  %v1168_v0 = vsel %vm248_vm2, %v2473_v33, %v674_v9 }
 0x20e   :  { %v1292_v51 = vsel %vm1285_vm11, %v1275_v12, %v1132_v50  ;;  %1015 = vrot.lane.b32.xlu1 %v2603_v59, %s2010_s19  ;;  %v518_v12 = vld [vmem:[#allocation2 + $0xa0] sm:$0xff] }
 0x20f   :  { %1915 = vmatprep.mubr.msk.f32.mxu1 %vm1302_vm12, %v1292_v51  ;;  %765 = vrot.lane.b32.xlu0 %v557_v18, %s2008_s1  ;;  %v1175_v51 = vsel %vm248_vm2, %v518_v12, %v2477_v35 }
 0x210   :  { %1916 = vmatmul.mubr.msk.f32.gmra.mrb[4].mxu1 %vm1302_vm12, %v1293_v52  ;;  %v800_v57 = vpop.permute.xlu1 %799  ;;  %v1192_v52 = vsel %vm1183_vm6, %v1175_v51, %v2466_v16 }
 0x211   :  { %v738_v37 = vpop.permute.xlu0 %737 }
 0x212   :  { %827 = vrot.lane.b32.xlu1 %v2667_v60, %s2013_s2  ;;  %v1185_v38 = vsel %vm1183_vm6, %v1168_v0, %v738_v37 }
 0x213   :  { %1017 = vrot.lane.b32.xlu0 %v2667_v60, %s2010_s19 }
 0x214   :  { %v802_v61 = vpop.permute.xlu1 %801 }
 0x215   :  { %v864_v63 = vpop.permute.xlu0 %863  ;;  %v1202_v5 = vsel %vm1200_vm5, %v1185_v38, %v802_v61 }
 0x216   :  { %1079 = vrot.lane.b32.xlu1 %v540_v8, %s2011_s20  ;;  %v1201_v8 = vsel %vm1200_vm5, %v1184_v23, %v800_v57 }
 0x217   :  { %829 = vrot.lane.b32.xlu0 %v573_v1, %s2013_s2  ;;  %v1218_v26 = vsel %vm1217_vm7, %v1201_v8, %v864_v63 }
 0x218   :  { %v866_v42 = vpop.permute.xlu1 %865 }
 0x219   :  { %v928_v55 = vpop.permute.xlu0 %927  ;;  %v1219_v49 = vsel %vm1217_vm7, %v1202_v5, %v866_v42 }
 0x21a   :  { %891 = vrot.lane.b32.xlu1 %v541_v45, %s2014_s3  ;;  %v1235_v7 = vsel %vm1234_vm8, %v1218_v26, %v928_v55 }
 0x21b   :  { %1081 = vrot.lane.b32.xlu0 %v541_v45, %s2011_s20 }
 0x21c   :  { %v930_v29 = vpop.permute.xlu1 %929 }
 0x21d   :  { %v992_v21 = vpop.permute.xlu0 %991  ;;  %v1236_v13 = vsel %vm1234_vm8, %v1219_v49, %v930_v29 }
 0x21e   :  { %1143 = vrot.lane.b32.xlu1 %v556_v30, %s2012_s21  ;;  %v1252_v40 = vsel %vm1251_vm9, %v1235_v7, %v992_v21 }
 0x21f   :  { %893 = vrot.lane.b32.xlu0 %v589_v22, %s2014_s3 }
 0x220   :  { %v1056_v54 = vpop.permute.xlu1 %1055 }
 0x221   :  { %v994_v24 = vpop.permute.xlu0 %993  ;;  %v1269_v14 = vsel %vm1268_vm10, %v1252_v40, %v1056_v54 }
 0x222   :  { %955 = vrot.lane.b32.xlu1 %v557_v18, %s2015_s26  ;;  %v1253_v15 = vsel %vm1251_vm9, %v1236_v13, %v994_v24 }
 0x223   :  { %1145 = vrot.lane.b32.xlu0 %v557_v18, %s2012_s21 }
 0x224   :  { %v1058_v62 = vpop.permute.xlu1 %1057 }
 0x225   :  { %v1120_v33 = vpop.permute.xlu0 %1119  ;;  %v1270_v27 = vsel %vm1268_vm10, %v1253_v15, %v1058_v62 }
 0x226   :  { %v1286_v58 = vsel %vm1285_vm11, %v1269_v14, %v1120_v33  ;;  %957 = vrot.lane.b32.xlu1 %v605_v56, %s2015_s26 }
 0x227   :  { %1906 = vmatprep.mubr.msk.f32.mxu0 %vm1302_vm12, %v1286_v58  ;;  %1019 = vrot.lane.b32.xlu0 %v573_v1, %s2010_s19 }
 0x228   :  { %v1122_v34 = vpop.permute.xlu1 %1121 }
 0x229   :  { %v1287_v36 = vsel %vm1285_vm11, %v1270_v27, %v1122_v34  ;;  %v690_v43 = vpop.permute.xlu0 %689 }
 0x22a   :  { %1907 = vmatmul.mubr.msk.f32.vlgmr.msra.gmra.mrb[16].mxu0 %vm1302_vm12, %v1287_v36  ;;  %1149 = vrot.lane.b32.xlu1 %v654_v32, %s2012_s21  ;;  %v1176_v47 = vsel %vm248_vm2, %v2514_v3, %v690_v43 }
 0x22b   :  { %1083 = vrot.lane.b32.xlu0 %v589_v22, %s2011_s20 }
 0x22c   :  { %v754_v44 = vpop.permute.xlu1 %753 }
 0x22d   :  { %v816_v45 = vpop.permute.xlu0 %815  ;;  %v1193_v16 = vsel %vm1183_vm6, %v1176_v47, %v754_v44 }
 0x22e   :  { %v1209_v37 = vsel %vm1200_vm5, %v1192_v52, %v816_v45 }
 0x22f   :  { %1147 = vrot.lane.b32.xlu0 %v605_v56, %s2012_s21 }
 0x230   :  { %v818_v28 = vpop.permute.xlu1 %817 }
 0x231   :  { %v880_v25 = vpop.permute.xlu0 %879  ;;  %v1210_v22 = vsel %vm1200_vm5, %v1193_v16, %v818_v28 }
 0x232   :  { %v1226_v63 = vsel %vm1217_vm7, %v1209_v37, %v880_v25 }
 0x234   :  { %v692_v17 = vpop.permute.xlu1 %691 }
 0x235   :  { %v882_v46 = vpop.permute.xlu0 %881  ;;  %v1177_v15 = vsel %vm248_vm2, %v2520_v4, %v692_v17 }
 0x236   :  { %v1227_v54 = vsel %vm1217_vm7, %v1210_v22, %v882_v46 }
 0x238   :  { %v944_v19 = vpop.permute.xlu1 %943 }
 0x239   :  { %v756_v2 = vpop.permute.xlu0 %755  ;;  %v1243_v1 = vsel %vm1234_vm8, %v1226_v63, %v944_v19 }
 0x23a   :  { %v1194_v32 = vsel %vm1183_vm6, %v1177_v15, %v756_v2 }
 0x23c   :  { %v694_v30 = vpop.permute.xlu1 %693 }
 0x23d   :  { %v1008_v6 = vpop.permute.xlu0 %1007  ;;  %v1178_v4 = vsel %vm248_vm2, %v2539_v53, %v694_v30 }
 0x23e   :  { %v1260_v42 = vsel %vm1251_vm9, %v1243_v1, %v1008_v6 }
 0x240   :  { %v946_v9 = vpop.permute.xlu1 %945 }
 0x241   :  { %v820_v11 = vpop.permute.xlu0 %819  ;;  %v1244_v8 = vsel %vm1234_vm8, %v1227_v54, %v946_v9 }
 0x242   :  { %v1211_v27 = vsel %vm1200_vm5, %v1194_v32, %v820_v11 }
 0x244   :  { %v758_v50 = vpop.permute.xlu1 %757 }
 0x245   :  { %v1072_v18 = vpop.permute.xlu0 %1071  ;;  %v1195_v17 = vsel %vm1183_vm6, %v1178_v4, %v758_v50 }
 0x246   :  { %v1277_v31 = vsel %vm1268_vm10, %v1260_v42, %v1072_v18 }
 0x248   :  { %v1010_v57 = vpop.permute.xlu1 %1009 }
 0x249   :  { %v884_v61 = vpop.permute.xlu0 %883  ;;  %v1261_v24 = vsel %vm1251_vm9, %v1244_v8, %v1010_v57 }
 0x24a   :  { %v1228_v36 = vsel %vm1217_vm7, %v1211_v27, %v884_v61 }
 0x24c   :  { %v822_v55 = vpop.permute.xlu1 %821 }
 0x24d   :  { %v1136_v29 = vpop.permute.xlu0 %1135  ;;  %v1212_v2 = vsel %vm1200_vm5, %v1195_v17, %v822_v55 }
 0x24e   :  { %v1294_v35 = vsel %vm1285_vm11, %v1277_v31, %v1136_v29 }
 0x24f   :  { %1918 = vmatprep.mubr.msk.f32.mxu1 %vm1302_vm12, %v1294_v35 }
 0x250   :  { %v1074_v21 = vpop.permute.xlu1 %1073 }
 0x251   :  { %v886_v23 = vpop.permute.xlu0 %885  ;;  %v1278_v26 = vsel %vm1268_vm10, %v1261_v24, %v1074_v21 }
 0x252   :  { %v1229_v9 = vsel %vm1217_vm7, %v1212_v2, %v886_v23 }
 0x254   :  { %v696_v0 = vpop.permute.xlu1 %695 }
 0x255   :  { %v1138_v38 = vpop.permute.xlu0 %1137  ;;  %v1179_v31 = vsel %vm248_vm2, %v2558_v20, %v696_v0 }
 0x256   :  { %v1295_v3 = vsel %vm1285_vm11, %v1278_v26, %v1138_v38 }
 0x257   :  { %1919 = vmatmul.mubr.msk.f32.gmra.mrb[6].mxu1 %vm1302_vm12, %v1295_v3 }
 0x258   :  { %v948_v7 = vpop.permute.xlu1 %947 }
 0x259   :  { %v760_v5 = vpop.permute.xlu0 %759  ;;  %v1245_v44 = vsel %vm1234_vm8, %v1228_v36, %v948_v7 }
 0x25a   :  { %v1196_v29 = vsel %vm1183_vm6, %v1179_v31, %v760_v5 }
 0x25c   :  { %v698_v40 = vpop.permute.xlu1 %697 }
 0x25d   :  { %v1012_v62 = vpop.permute.xlu0 %1011  ;;  %v1180_v23 = vsel %vm248_vm2, %v2592_v10, %v698_v40 }
 0x25e   :  { %v1262_v45 = vsel %vm1251_vm9, %v1245_v44, %v1012_v62 }
 0x260   :  { %v950_v49 = vpop.permute.xlu1 %949 }
 0x261   :  { %v824_v14 = vpop.permute.xlu0 %823  ;;  %v1246_v12 = vsel %vm1234_vm8, %v1229_v9, %v950_v49 }
 0x262   :  { %v1213_v35 = vsel %vm1200_vm5, %v1196_v29, %v824_v14 }
 0x264   :  { %v762_v33 = vpop.permute.xlu1 %761 }
 0x265   :  { %v1076_v56 = vpop.permute.xlu0 %1075  ;;  %v1197_v8 = vsel %vm1183_vm6, %v1180_v23, %v762_v33 }
 0x266   :  { %v1279_v28 = vsel %vm1268_vm10, %v1262_v45, %v1076_v56 }
 0x268   :  { %v1014_v13 = vpop.permute.xlu1 %1013 }
 0x269   :  { %v826_v58 = vpop.permute.xlu0 %825  ;;  %v1263_v51 = vsel %vm1251_vm9, %v1246_v12, %v1014_v13 }
 0x26a   :  { %v1214_v0 = vsel %vm1200_vm5, %v1197_v8, %v826_v58 }
 0x26c   :  { %v888_v34 = vpop.permute.xlu1 %887 }
 0x26d   :  { %v1078_v43 = vpop.permute.xlu0 %1077  ;;  %v1230_v16 = vsel %vm1217_vm7, %v1213_v35, %v888_v34 }
 0x26e   :  { %v1280_v18 = vsel %vm1268_vm10, %v1263_v51, %v1078_v43 }
 0x270   :  { %v1140_v25 = vpop.permute.xlu1 %1139 }
 0x271   :  { %v1296_v46 = vsel %vm1285_vm11, %v1279_v28, %v1140_v25  ;;  %v700_v19 = vpop.permute.xlu0 %699 }
 0x272   :  { %1921 = vmatprep.mubr.msk.f32.mxu1 %vm1302_vm12, %v1296_v46  ;;  %v1181_v27 = vsel %vm248_vm2, %v2603_v59, %v700_v19 }
 0x274   :  { %v890_v6 = vpop.permute.xlu1 %889 }
 0x275   :  { %v952_v11 = vpop.permute.xlu0 %951  ;;  %v1231_v3 = vsel %vm1217_vm7, %v1214_v0, %v890_v6 }
 0x276   :  { %v1247_v22 = vsel %vm1234_vm8, %v1230_v16, %v952_v11 }
 0x278   :  { %v1142_v52 = vpop.permute.xlu1 %1141 }
 0x279   :  { %v1297_v57 = vsel %vm1285_vm11, %v1280_v18, %v1142_v52  ;;  %v702_v53 = vpop.permute.xlu0 %701 }
 0x27a   :  { %1922 = vmatmul.mubr.msk.f32.gmra.mrb[8].mxu1 %vm1302_vm12, %v1297_v57  ;;  %v1182_v49 = vsel %vm248_vm2, %v2667_v60, %v702_v53 }
 0x27c   :  { %v764_v30 = vpop.permute.xlu1 %763 }
 0x27d   :  { %v954_v50 = vpop.permute.xlu0 %953  ;;  %v1198_v34 = vsel %vm1183_vm6, %v1181_v27, %v764_v30 }
 0x27e   :  { %v1248_v7 = vsel %vm1234_vm8, %v1231_v3, %v954_v50 }
 0x280   :  { %v1016_v37 = vpop.permute.xlu1 %1015 }
 0x281   :  { %v766_v61 = vpop.permute.xlu0 %765  ;;  %v1264_v54 = vsel %vm1251_vm9, %v1247_v22, %v1016_v37 }
 0x282   :  { %v1199_v33 = vsel %vm1183_vm6, %v1182_v49, %v766_v61 }
 0x284   :  { %v828_v63 = vpop.permute.xlu1 %827 }
 0x285   :  { %v1018_v1 = vpop.permute.xlu0 %1017  ;;  %v1215_v60 = vsel %vm1200_vm5, %v1198_v34, %v828_v63 }
 0x286   :  { %v1265_v10 = vsel %vm1251_vm9, %v1248_v7, %v1018_v1 }
 0x288   :  { %v1080_v42 = vpop.permute.xlu1 %1079 }
 0x289   :  { %v830_v55 = vpop.permute.xlu0 %829  ;;  %v1281_v24 = vsel %vm1268_vm10, %v1264_v54, %v1080_v42 }
 0x28a   :  { %v1216_v56 = vsel %vm1200_vm5, %v1199_v33, %v830_v55 }
 0x28c   :  { %v892_v47 = vpop.permute.xlu1 %891 }
 0x28d   :  { %v1082_v21 = vpop.permute.xlu0 %1081  ;;  %v1232_v44 = vsel %vm1217_vm7, %v1215_v60, %v892_v47 }
 0x28e   :  { %v1282_v40 = vsel %vm1268_vm10, %v1265_v10, %v1082_v21 }
 0x290   :  { %v1144_v20 = vpop.permute.xlu1 %1143 }
 0x291   :  { %v1298_v26 = vsel %vm1285_vm11, %v1281_v24, %v1144_v20  ;;  %v894_v38 = vpop.permute.xlu0 %893 }
 0x292   :  { %1924 = vmatprep.mubr.msk.f32.mxu1 %vm1302_vm12, %v1298_v26  ;;  %v1233_v58 = vsel %vm1217_vm7, %v1216_v56, %v894_v38 }
 0x294   :  { %v956_v5 = vpop.permute.xlu1 %955 }
 0x295   :  { %v1146_v62 = vpop.permute.xlu0 %1145  ;;  %v1249_v45 = vsel %vm1234_vm8, %v1232_v44, %v956_v5 }
 0x296   :  { %v1299_v14 = vsel %vm1285_vm11, %v1282_v40, %v1146_v62 }
 0x297   :  { %1925 = vmatmul.mubr.msk.f32.gmra.mrb[10].mxu1 %vm1302_vm12, %v1299_v14 }
 0x298   :  { %v958_v13 = vpop.permute.xlu1 %957 }
 0x299   :  { %v1020_v15 = vpop.permute.xlu0 %1019  ;;  %v1250_v32 = vsel %vm1234_vm8, %v1233_v58, %v958_v13 }
 0x29a   :  { %v1267_v36 = vsel %vm1251_vm9, %v1250_v32, %v2489_v39  ;;  %v1266_v28 = vsel %vm1251_vm9, %v1249_v45, %v1020_v15 }
 0x29b   :  { %v1284_v46 = vsel %vm1268_vm10, %v1267_v36, %v2498_v41 }
 0x29c   :  { %v1150_v25 = vpop.permute.xlu1 %1149 }
 0x29d   :  { %v1084_v43 = vpop.permute.xlu0 %1083  ;;  %v1301_v17 = vsel %vm1285_vm11, %v1284_v46, %v1150_v25 }
 0x29e   :  { %v1283_v59 = vsel %vm1268_vm10, %v1266_v28, %v1084_v43 }
 0x2a1   :  { %v1148_v19 = vpop.permute.xlu0 %1147 }
 0x2a2   :  { %v1300_v4 = vsel %vm1285_vm11, %v1283_v59, %v1148_v19 }
 0x2a3   :  { %1927 = vmatprep.mubr.msk.f32.mxu1 %vm1302_vm12, %v1300_v4 }
 0x2a4   :  { %1928 = vmatmul.mubr.msk.f32.gmra.mrb[12].mxu1 %vm1302_vm12, %v1301_v17 }
 0x2b9   :  { %v1911_v39 = vpop.f32.mrb[0].mxu1 }
 0x2ba   :  { %v1427_v2 = vpop.f32.mrb[1].mxu1  ;;  %v1503_v50 = vsel %vm248_vm2, %v1911_v39, 0.0 }
 0x2bb   :  { %v1501_v53 = vsel %vm248_vm2, %v1427_v2, 0.0 }
 0x2d9   :  { %v1914_v6 = vpop.f32.mrb[2].mxu1 }
 0x2da   :  { %v1437_v9 = vpop.f32.mrb[3].mxu1  ;;  %v1507_v1 = vsel %vm248_vm2, %v1914_v6, 0.0 }
 0x2db   :  { %v1505_v61 = vsel %vm248_vm2, %v1437_v9, 0.0 }
 0x2e3   :  { %v1917_v11 = vpop.f32.mrb[4].mxu1 }
 0x2e4   :  { %v1447_v12 = vpop.f32.mrb[5].mxu1  ;;  %v1511_v29 = vsel %vm248_vm2, %v1917_v11, 0.0 }
 0x2e5   :  { %v1509_v55 = vsel %vm248_vm2, %v1447_v12, 0.0 }
 0x2fd   :  { %v1908_v51 = vpop.f32.mrb[16].mxu0 }
 0x2fe   :  { %v1499_v41 = vsel %vm248_vm2, %v1908_v51, 0.0  ;;  %v1417_v18 = vpop.f32.mrb[17].mxu0 }
 0x2ff   :  { %v1498_v52 = vsel %vm248_vm2, %v1417_v18, 0.0 }
 0x300   :  { %v1500_v57 = vadd.f32 %v1499_v41, %v1498_v52 }
 0x302   :  { %v1502_v30 = vadd.f32 %v1501_v53, %v1500_v57  ;;  %v2817_v53 = vld [vmem:[%s2880_s5] sm:$0x1]  ;;  %s2016_s5 = smov [#allocation3]  }
 0x304   :  { %v1504_v37 = vadd.f32 %v1503_v50, %v1502_v30 }
 0x306   :  { %v1506_v63 = vadd.f32 %v1505_v61, %v1504_v37 }
 0x308   :  { %v1508_v42 = vadd.f32 %v1507_v1, %v1506_v63  ;;  %v2824_v63 = vld [vmem:[%s2881_s6] ss:$0 sm:$0xff]  ;;  %s1762_s6 = sshll.u32 %s2016_s5, 4  ;;  %s1763_s6 = int_to_ptr.vmem [resolvable:$true] %s1762_s6 }
 0x309   :  { %s1983_s21 = scalar_lea.vmem %s1763_s6, 256  ;;  %p1988_p1 = scmp.lt.s32.totalorder %s1763_s6, %s1763_s6 }
 0x30a   :  { %v1510_v31 = vadd.f32 %v1509_v55, %v1508_v42  ;;  %p1984_p0 = scmp.ne.s32.totalorder %s1763_s6, %s1983_s21  ;;  %p1989_p2 = scmp.lt.s32.totalorder %s1983_s21, %s1983_s21 }
 0x30c   :  { %v1512_v35 = vadd.f32 %v1511_v29, %v1510_v31  ;;  %p1990_p3 = por %p1989_p2, %p1988_p1 }
 0x30e   :  { %v1513_v47 = vrot.slane %v1512_v35, 4  ;;  %p1991_p4 = pnand %p1990_p3, %p1984_p0 }
 0x310   :  { %v1514_v16 = vadd.f32 %v1513_v47, %v1512_v35 }
 0x312   :  { %v1515_v21 = vrot.slane %v1514_v16, 2 }
 0x314   :  { %v1516_v22 = vadd.f32 %v1515_v21, %v1514_v16 }
 0x316   :  { %v1517_v23 = vrot.slane %v1516_v22, 1 }
 0x318   :  { %v1518_v54 = vadd.f32 %v1517_v23, %v1516_v22 }
 0x31a   :  { %v1540_v8 = vmul.f32 0.015625, %v1518_v54 }
 0x31c   :  { %v1542_v24 = vsub.f32 %v1417_v18, %v1540_v8  ;;  %v1543_v20 = vsub.f32 %v1908_v51, %v1540_v8  ;;  %v1544_v0 = vsub.f32 %v1427_v2, %v1540_v8  ;;  %v1545_v26 = vsub.f32 %v1911_v39, %v1540_v8 }
 0x31d   :  { %v1546_v38 = vsub.f32 %v1437_v9, %v1540_v8  ;;  %v1547_v3 = vsub.f32 %v1914_v6, %v1540_v8  ;;  %v1548_v7 = vsub.f32 %v1447_v12, %v1540_v8  ;;  %v1549_v10 = vsub.f32 %v1917_v11, %v1540_v8 }
 0x31e   :  { %v1558_v5 = vmul.f32 %v1542_v24, %v1542_v24  ;;  %v1559_v40 = vmul.f32 %v1543_v20, %v1543_v20  ;;  %v1560_v62 = vmul.f32 %v1544_v0, %v1544_v0  ;;  %v1561_v49 = vmul.f32 %v1545_v26, %v1545_v26 }
 0x31f   :  { %v1562_v13 = vmul.f32 %v1546_v38, %v1546_v38  ;;  %v1563_v32 = vmul.f32 %v1547_v3, %v1547_v3  ;;  %v1564_v60 = vmul.f32 %v1548_v7, %v1548_v7  ;;  %v1565_v44 = vmul.f32 %v1549_v10, %v1549_v10 }
 0x320   :  { %v1574_v14 = vsel %vm248_vm2, %v1558_v5, 0.0  ;;  %v1575_v33 = vsel %vm248_vm2, %v1559_v40, 0.0  ;;  %v1577_v58 = vsel %vm248_vm2, %v1560_v62, 0.0  ;;  %v1579_v27 = vsel %vm248_vm2, %v1561_v49, 0.0 }
 0x321   :  { %v1576_v56 = vadd.f32 %v1575_v33, %v1574_v14  ;;  %v1581_v36 = vsel %vm248_vm2, %v1562_v13, 0.0  ;;  %v1583_v45 = vsel %vm248_vm2, %v1563_v32, 0.0  ;;  %v1585_v25 = vsel %vm248_vm2, %v1564_v60, 0.0 }
 0x322   :  { %v1587_v17 = vsel %vm248_vm2, %v1565_v44, 0.0 }
 0x323   :  { %v1578_v15 = vadd.f32 %v1577_v58, %v1576_v56 }
 0x325   :  { %v1580_v34 = vadd.f32 %v1579_v27, %v1578_v15 }
 0x327   :  { %v1582_v43 = vadd.f32 %v1581_v36, %v1580_v34 }
 0x329   :  { %v1584_v28 = vadd.f32 %v1583_v45, %v1582_v43 }
 0x32a   :  { %v2805_v46 = vpop.f32.mrb[6].mxu1 }
 0x32b   :  { %v1586_v59 = vadd.f32 %v1585_v25, %v1584_v28  ;;  %v1520_v19 = vsel %vm248_vm2, %v2805_v46, 0.0  ;;  %v2809_v4 = vpop.f32.mrb[7].mxu1 }
 0x32c   :  { %v1519_v39 = vsel %vm248_vm2, %v2809_v4, 0.0 }
 0x32d   :  { %v1588_v2 = vadd.f32 %v1587_v17, %v1586_v59  ;;  %v1521_v6 = vadd.f32 %v1520_v19, %v1519_v39 }
 0x32f   :  { %v1589_v9 = vrot.slane %v1588_v2, 4 }
 0x331   :  { %v1590_v11 = vadd.f32 %v1589_v9, %v1588_v2 }
 0x333   :  { %v1591_v12 = vrot.slane %v1590_v11, 2 }
 0x335   :  { %v1592_v51 = vadd.f32 %v1591_v12, %v1590_v11 }
 0x337   :  { %v1593_v41 = vrot.slane %v1592_v51, 1 }
 0x339   :  { %v1594_v18 = vadd.f32 %v1593_v41, %v1592_v51 }
 0x33b   :  { %v1616_v52 = vmul.f32 0.015625, %v1594_v18 }
 0x33d   :  { %v1618_v57 = vadd.f32 1e-05, %v1616_v52 }
 0x33f   :  { %1979 = vrsqrt.f32 %v1618_v57 }
 0x349   :  { %v1980_v30 = vpop.eup %1979 }
 0x34a   :  { %v1622_v50 = vmul.f32 %v1980_v30, %v2817_v53 }
 0x34c   :  { %v1629_v37 = vrot.slane %v1622_v50, %v2301_v48 }
 0x34d   :  { %v1923_v61 = vpop.f32.mrb[8].mxu1 }
 0x34e   :  { %v1636_v1 = vmul.f32 %v1629_v37, %v1542_v24  ;;  %v1467_v42 = vpop.f32.mrb[9].mxu1  ;;  %v1637_v55 = vmul.f32 %v1629_v37, %v1543_v20  ;;  %v1638_v31 = vmul.f32 %v1629_v37, %v1544_v0  ;;  %v1639_v35 = vmul.f32 %v1629_v37, %v1545_v26 }
 0x34f   :  { %v1522_v29 = vsel %vm248_vm2, %v1467_v42, 0.0  ;;  %v1640_v47 = vmul.f32 %v1629_v37, %v1546_v38  ;;  %v1641_v16 = vmul.f32 %v1629_v37, %v1547_v3  ;;  %v1524_v23 = vsel %vm248_vm2, %v1923_v61, 0.0 }
 0x350   :  { %v1523_v21 = vadd.f32 %v1522_v29, %v1521_v6  ;;  %v1658_v22 = vadd.f32 %v2824_v63, %v1636_v1  ;;  %v1642_v54 = vmul.f32 %v1629_v37, %v1548_v7  ;;  %v1659_v5 = vadd.f32 %v2824_v63, %v1637_v55 }
 0x351   :  { %v1643_v24 = vmul.f32 %v1629_v37, %v1549_v10  ;;  %v1660_v20 = vadd.f32 %v2824_v63, %v1638_v31  ;;  %v1661_v26 = vadd.f32 %v2824_v63, %v1639_v35  ;;  %v1662_v3 = vadd.f32 %v2824_v63, %v1640_v47 }
 0x352   :  { %v1674_v8 = vmax.f32 %v1658_v22, 0.0  ;;  %v1525_v40 = vadd.f32 %v1524_v23, %v1523_v21  ;;  %v1675_v62 = vmax.f32 %v1659_v5, 0.0  ;;  %v1663_v7 = vadd.f32 %v2824_v63, %v1641_v16 }
 0x353   :  { %v1676_v0 = vmax.f32 %v1660_v20, 0.0  ;;  %v1677_v38 = vmax.f32 %v1661_v26, 0.0  ;;  %v1678_v49 = vmax.f32 %v1662_v3, 0.0  ;;  %v1664_v33 = vadd.f32 %v2824_v63, %v1642_v54 }
 0x354   :  { %1690 = vxpose.xlu0.b32.start [1/8] (short) (narrow) %v1674_v8, 8  ;;  %v1679_v14 = vmax.f32 %v1663_v7, 0.0  ;;  %v1665_v13 = vadd.f32 %v2824_v63, %v1643_v24 }
 0x355   :  { %v1680_v56 = vmax.f32 %v1664_v33, 0.0 }
 0x356   :  { %v1681_v34 = vmax.f32 %v1665_v13, 0.0 }
 0x358   :  { %1691 = vxpose.xlu0.b32.cont [2/8] (short) (narrow) %v1675_v62, 8 }
 0x35c   :  { %1692 = vxpose.xlu0.b32.cont [3/8] (short) (narrow) %v1676_v0, 8 }
 0x360   :  { %1693 = vxpose.xlu0.b32.cont [4/8] (short) (narrow) %v1677_v38, 8 }
 0x364   :  { %1694 = vxpose.xlu0.b32.cont [5/8] (short) (narrow) %v1678_v49, 8 }
 0x368   :  { %1695 = vxpose.xlu0.b32.cont [6/8] (short) (narrow) %v1679_v14, 8 }
 0x36a   :  { %v1926_v10 = vpop.f32.mrb[10].mxu1 }
 0x36b   :  { %v1477_v58 = vpop.f32.mrb[11].mxu1  ;;  %v1528_v27 = vsel %vm248_vm2, %v1926_v10, 0.0 }
 0x36c   :  { %v1526_v15 = vsel %vm248_vm2, %v1477_v58, 0.0  ;;  %1696 = vxpose.xlu0.b32.cont [7/8] (short) (narrow) %v1680_v56, 8 }
 0x36d   :  { %v1527_v32 = vadd.f32 %v1526_v15, %v1525_v40 }
 0x36f   :  { %v1529_v60 = vadd.f32 %v1528_v27, %v1527_v32 }
 0x370   :  { %1697 = vxpose.xlu0.b32.end [8/8] (short) (narrow) %v1681_v34, 8 }
 0x377   :  { %v1929_v36 = vpop.f32.mrb[12].mxu1 }
 0x378   :  { %v1487_v43 = vpop.f32.mrb[13].mxu1  ;;  %v1532_v28 = vsel %vm248_vm2, %v1929_v36, 0.0 }
 0x379   :  { %v1530_v44 = vsel %vm248_vm2, %v1487_v43, 0.0 }
 0x37a   :  { %v1531_v45 = vadd.f32 %v1530_v44, %v1529_v60 }
 0x37c   :  { %v1533_v25 = vadd.f32 %v1532_v28, %v1531_v45 }
 0x37e   :  { %v1534_v59 = vrot.slane %v1533_v25, 4 }
 0x380   :  { %v1535_v19 = vadd.f32 %v1534_v59, %v1533_v25 }
 0x382   :  { %v1536_v17 = vrot.slane %v1535_v19, 2 }
 0x384   :  { %v1537_v39 = vadd.f32 %v1536_v17, %v1535_v19 }
 0x386   :  { %v1538_v2 = vrot.slane %v1537_v39, 1 }
 0x388   :  { %v1539_v6 = vadd.f32 %v1538_v2, %v1537_v39 }
 0x38a   :  { %v1541_v9 = vmul.f32 0.015625, %v1539_v6 }
 0x38c   :  { %v1550_v11 = vsub.f32 %v2809_v4, %v1541_v9  ;;  %v1551_v12 = vsub.f32 %v2805_v46, %v1541_v9  ;;  %v1552_v51 = vsub.f32 %v1467_v42, %v1541_v9  ;;  %v1553_v41 = vsub.f32 %v1923_v61, %v1541_v9 }
 0x38d   :  { %v1554_v18 = vsub.f32 %v1477_v58, %v1541_v9  ;;  %v1555_v52 = vsub.f32 %v1926_v10, %v1541_v9  ;;  %v1556_v57 = vsub.f32 %v1487_v43, %v1541_v9  ;;  %v1557_v30 = vsub.f32 %v1929_v36, %v1541_v9 }
 0x38e   :  { %v1566_v50 = vmul.f32 %v1550_v11, %v1550_v11  ;;  %v1567_v37 = vmul.f32 %v1551_v12, %v1551_v12  ;;  %v1568_v1 = vmul.f32 %v1552_v51, %v1552_v51  ;;  %v1569_v55 = vmul.f32 %v1553_v41, %v1553_v41 }
 0x38f   :  { %v1570_v47 = vmul.f32 %v1554_v18, %v1554_v18  ;;  %v1571_v46 = vmul.f32 %v1555_v52, %v1555_v52  ;;  %v1572_v21 = vmul.f32 %v1556_v57, %v1556_v57  ;;  %v1573_v54 = vmul.f32 %v1557_v30, %v1557_v30 }
 0x390   :  { %v1595_v31 = vsel %vm248_vm2, %v1566_v50, 0.0  ;;  %v1596_v29 = vsel %vm248_vm2, %v1567_v37, 0.0  ;;  %v1598_v4 = vsel %vm248_vm2, %v1568_v1, 0.0  ;;  %v1600_v61 = vsel %vm248_vm2, %v1569_v55, 0.0 }
 0x391   :  { %v1597_v35 = vadd.f32 %v1596_v29, %v1595_v31  ;;  %v1602_v22 = vsel %vm248_vm2, %v1570_v47, 0.0  ;;  %v1604_v8 = vsel %vm248_vm2, %v1571_v46, 0.0  ;;  %v1606_v40 = vsel %vm248_vm2, %v1572_v21, 0.0 }
 0x392   :  { %v1608_v62 = vsel %vm248_vm2, %v1573_v54, 0.0 }
 0x393   :  { %v1599_v16 = vadd.f32 %v1598_v4, %v1597_v35 }
 0x395   :  { %v1601_v42 = vadd.f32 %v1600_v61, %v1599_v16 }
 0x397   :  { %v1603_v23 = vadd.f32 %v1602_v22, %v1601_v42 }
 0x399   :  { %v1605_v5 = vadd.f32 %v1604_v8, %v1603_v23 }
 0x39b   :  { %v1607_v24 = vadd.f32 %v1606_v40, %v1605_v5 }
 0x39d   :  { %v1609_v20 = vadd.f32 %v1608_v62, %v1607_v24 }
 0x39f   :  { %v1610_v0 = vrot.slane %v1609_v20, 4 }
 0x3a1   :  { %v1611_v26 = vadd.f32 %v1610_v0, %v1609_v20 }
 0x3a3   :  { %v1612_v38 = vrot.slane %v1611_v26, 2 }
 0x3a5   :  { %v1613_v3 = vadd.f32 %v1612_v38, %v1611_v26 }
 0x3a7   :  { %v1614_v49 = vrot.slane %v1613_v3, 1 }
 0x3a9   :  { %v1615_v7 = vadd.f32 %v1614_v49, %v1613_v3 }
 0x3ab   :  { %v1617_v14 = vmul.f32 0.015625, %v1615_v7 }
 0x3ad   :  { %v1619_v33 = vadd.f32 1e-05, %v1617_v14 }
 0x3af   :  { %1981 = vrsqrt.f32 %v1619_v33 }
 0x3b9   :  { %v1982_v10 = vpop.eup %1981 }
 0x3ba   :  { %v1623_v56 = vmul.f32 %v1982_v10, %v2817_v53 }
 0x3bc   :  { %v1633_v13 = vrot.slane %v1623_v56, %v2301_v48 }
 0x3be   :  { %v1650_v58 = vmul.f32 %v1633_v13, %v1556_v57  ;;  %v1644_v15 = vmul.f32 %v1633_v13, %v1550_v11  ;;  %v1645_v32 = vmul.f32 %v1633_v13, %v1551_v12  ;;  %v1646_v27 = vmul.f32 %v1633_v13, %v1552_v51 }
 0x3bf   :  { %v1647_v34 = vmul.f32 %v1633_v13, %v1553_v41  ;;  %v1648_v60 = vmul.f32 %v1633_v13, %v1554_v18  ;;  %v1649_v36 = vmul.f32 %v1633_v13, %v1555_v52  ;;  %v1651_v43 = vmul.f32 %v1633_v13, %v1557_v30 }
 0x3c0   :  { %v1666_v44 = vadd.f32 %v2824_v63, %v1644_v15  ;;  %v1667_v28 = vadd.f32 %v2824_v63, %v1645_v32  ;;  %v1668_v59 = vadd.f32 %v2824_v63, %v1646_v27  ;;  %v1672_v11 = vadd.f32 %v2824_v63, %v1650_v58 }
 0x3c1   :  { %v1669_v48 = vadd.f32 %v2824_v63, %v1647_v34  ;;  %v1670_v17 = vadd.f32 %v2824_v63, %v1648_v60  ;;  %v1671_v2 = vadd.f32 %v2824_v63, %v1649_v36  ;;  %v1673_v51 = vadd.f32 %v2824_v63, %v1651_v43 }
 0x3c2   :  { %v1682_v45 = vmax.f32 %v1666_v44, 0.0  ;;  %v1683_v25 = vmax.f32 %v1667_v28, 0.0  ;;  %v1684_v53 = vmax.f32 %v1668_v59, 0.0  ;;  %v1688_v12 = vmax.f32 %v1672_v11, 0.0 }
 0x3c3   :  { %v1685_v19 = vmax.f32 %v1669_v48, 0.0  ;;  %v1686_v39 = vmax.f32 %v1670_v17, 0.0  ;;  %v1687_v9 = vmax.f32 %v1671_v2, 0.0  ;;  %v1689_v41 = vmax.f32 %v1673_v51, 0.0 }
 0x3c4   :  { %1723 = vxpose.xlu1.b32.start [1/8] (short) (narrow) %v1682_v45, 8 }
 0x3c8   :  { %1724 = vxpose.xlu1.b32.cont [2/8] (short) (narrow) %v1683_v25, 8 }
 0x3cc   :  { %1725 = vxpose.xlu1.b32.cont [3/8] (short) (narrow) %v1684_v53, 8 }
 0x3d0   :  { %1726 = vxpose.xlu1.b32.cont [4/8] (short) (narrow) %v1685_v19, 8 }
 0x3d4   :  { %1727 = vxpose.xlu1.b32.cont [5/8] (short) (narrow) %v1686_v39, 8  ;;  %v1706_v6 = vpop.trf.xlu0 }
 0x3d5   :  { %1722 = vst.msk [vmem:[#allocation3] sm:$0xff] %vm1285_vm11, %v1706_v6 }
 0x3d8   :  { %1728 = vxpose.xlu1.b32.cont [6/8] (short) (narrow) %v1687_v9, 8 }
 0x3dc   :  { %1729 = vxpose.xlu1.b32.cont [7/8] (short) (narrow) %v1688_v12, 8 }
 0x3e0   :  { %1730 = vxpose.xlu1.b32.end [8/8] (short) (narrow) %v1689_v41, 8 }
 0x444   :  { %v1739_v18 = vpop.trf.xlu1 }
 0x445   :  { %1756 = vst.msk [vmem:[#allocation3 + $0x8] sm:$0xff] %vm1285_vm11, %v1739_v18 }
 0x446   :  { %1994 = shalt.err (!%p1991_p4)
}
 0x447   :  { %s1995_s3 = scalar_lea.hbm %s2882_s7, 256 }
 0x448   :  { %p1996_p5 = scmp.ne.s32.totalorder %s2882_s7, %s1995_s3  ;;  %p1999_p6 = scmp.lt.u32.totalorder %s1995_s3, %s2882_s7 }
 0x44a   :  { %p2001_p7 = pnand %p1999_p6, %p1996_p5 }
 0x44c   :  { %2004 = shalt.err (!%p2001_p7)
}
 0x44d   :  { %s2017_s30 = smov 128  }
 0x44e   :  { %1768 = dma.vmem_to_hbm [thread:$0]  %s1763_s6, 256, %s2882_s7, [#allocation4], %s2017_s30, %s2017_s30, %s2009_s0  }
 0x44f   :  { %2005 = dma.done.wait [#allocation4], 256  }
 0x450   :  { %2006 = vsyncadd [#allocation4], 4294967040 }
 0x451   :  { %1772 = vsyncpa [#allocation4], 1 }

</bundles_post_ra>
